<compile_context>
chip_gen: v7x
topology: tpu7x:2x2x1
jax: 0.10.0
libtpu: 0.0.40
codegen_flags: <defaults>
</compile_context>

<pallas_src>
import functools

import jax
import jax.numpy as jnp
from jax.experimental import pallas as pl
from jax.experimental.pallas import tpu as pltpu


# ---------------------- fused conv + ReLU + 2x2 maxpool ---------------------- #

def _conv_pool_kernel(xq_ref, w_ref, b_ref, o_ref, *, Wq, Nq, M, cout):
    """One image: 3x3 conv (pad=1) + bias + ReLU + 2x2/2 maxpool, all in VMEM.

    xq_ref: (1, 4, Cin, Nbuf) zero-padded flattened quadrant images; quadrant
            q = qy*2+qx holds x[:, qy::2, qx::2]; real data occupies columns
            [M, M+Nq) of the buffer, Nq = (H/2+2)*(W/2+2), Wq = W/2+2.
    w_ref:  (9, Cout, Cin) conv taps, tap index = kh*3 + kw.
    b_ref:  (Cout, 1)
    o_ref:  (1, Cout, Nq) pooled output; pooled pixel (i, j) lives at flat
            column (i+1)*Wq + (j+1) (border columns are garbage, stripped
            by the wrapper).
    """
    quads = [xq_ref[0, q] for q in range(4)]       # 4 x (Cin, Nbuf)
    wts = [w_ref[t] for t in range(9)]             # 9 x (Cout, Cin)
    bias = b_ref[...]                              # (Cout, 1)

    pooled = None
    for py in range(2):                            # pooling-window row phase
        for px in range(2):                        # pooling-window col phase
            acc = jnp.zeros((cout, Nq), jnp.float32)
            for kh in range(3):
                for kw in range(3):
                    u = py + kh - 1                # row offset in original image
                    v = px + kw - 1                # col offset in original image
                    qu, su = u % 2, u // 2         # quadrant parity / shift
                    qv, sv = v % 2, v // 2
                    off = M + su * Wq + sv         # contiguous lane slice start
                    rhs = quads[qu * 2 + qv][:, off:off + Nq]   # (Cin, Nq)
                    acc = acc + jnp.dot(wts[kh * 3 + kw], rhs,
                                        preferred_element_type=jnp.float32)
            pooled = acc if pooled is None else jnp.maximum(pooled, acc)

    # bias is phase-independent and ReLU is monotonic -> apply once after max.
    o_ref[0] = jnp.maximum(pooled + bias, 0.0).astype(o_ref.dtype)


def _quadrant_pack(x):
    """(B, C, H, W) -> (B, 4, C, Nbuf) padded, flattened quadrants + geometry."""
    B, C, H, W = x.shape
    H2, W2 = H // 2, W // 2
    Hq, Wq = H2 + 2, W2 + 2
    Nq = Hq * Wq
    M = Wq + 1                                     # >= max |tap slice offset|
    xq = x.reshape(B, C, H2, 2, W2, 2)             # (B, C, i, qy, j, qx)
    xq = jnp.transpose(xq, (0, 3, 5, 1, 2, 4))     # (B, qy, qx, C, i, j)
    xq = xq.reshape(B, 4, C, H2, W2)
    xq = jnp.pad(xq, ((0, 0), (0, 0), (0, 0), (1, 1), (1, 1)))   # conv zero ring
    xq = xq.reshape(B, 4, C, Nq)
    xq = jnp.pad(xq, ((0, 0), (0, 0), (0, 0), (M, M)))           # slice guard
    return xq, (H2, W2, Hq, Wq, Nq, M)


def conv_relu_pool(x, w_torch, bias):
    """maxpool2x2(relu(conv3x3_pad1(x))) — one Pallas kernel, grid over batch.

    x:       (B, Cin, H, W) float32 (NCHW / PyTorch layout)
    w_torch: (Cout, Cin, 3, 3)      (PyTorch nn.Conv2d weight layout)
    bias:    (Cout,)
    returns  (B, Cout, H//2, W//2)  NCHW
    """
    B, Cin, H, W = x.shape
    Cout = w_torch.shape[0]
    xq, (H2, W2, Hq, Wq, Nq, M) = _quadrant_pack(x.astype(jnp.float32))
    Nbuf = Nq + 2 * M
    # (Cout, Cin, kh, kw) -> (kh, kw, Cout, Cin) -> (9, Cout, Cin), tap = kh*3+kw
    w_taps = jnp.transpose(w_torch, (2, 3, 0, 1)).reshape(9, Cout, Cin)
    kern = functools.partial(_conv_pool_kernel, Wq=Wq, Nq=Nq, M=M, cout=Cout)
    out_flat = pl.pallas_call(
        kern,
        out_shape=jax.ShapeDtypeStruct((B, Cout, Nq), jnp.float32),
        grid=(B,),
        in_specs=[
            pl.BlockSpec((1, 4, Cin, Nbuf), lambda b: (b, 0, 0, 0)),
            pl.BlockSpec((9, Cout, Cin), lambda b: (0, 0, 0)),
            pl.BlockSpec((Cout, 1), lambda b: (0, 0)),
        ],
        out_specs=pl.BlockSpec((1, Cout, Nq), lambda b: (b, 0, 0)),
        compiler_params=pltpu.CompilerParams(
            dimension_semantics=("parallel",)),
    )(xq, w_taps.astype(jnp.float32),
      bias.reshape(Cout, 1).astype(jnp.float32))
    # valid pooled pixels sit at flat column (i+1)*Wq + (j+1)
    return out_flat.reshape(B, Cout, Hq, Wq)[:, :, 1:1 + H2, 1:1 + W2]


# --------------------------- fused fc1+ReLU+fc2 ------------------------------ #

def _mlp_kernel(x_ref, w1_ref, b1_ref, w2_ref, b2_ref, o_ref):
    h = jnp.dot(x_ref[...], w1_ref[...], preferred_element_type=jnp.float32)
    h = jnp.maximum(h + b1_ref[...], 0.0)
    y = jnp.dot(h, w2_ref[...], preferred_element_type=jnp.float32) + b2_ref[...]
    o_ref[...] = y.astype(o_ref.dtype)


def fused_mlp(x, wf1, bf1, wf2, bf2):
    """fc2(relu(fc1(x))) in a single Pallas call; weights in torch (out, in)."""
    B, K = x.shape
    F = wf1.shape[0]
    O = wf2.shape[0]
    return pl.pallas_call(
        _mlp_kernel,
        out_shape=jax.ShapeDtypeStruct((B, O), jnp.float32),
        grid=(1,),
        in_specs=[
            pl.BlockSpec((B, K), lambda i: (0, 0)),
            pl.BlockSpec((K, F), lambda i: (0, 0)),
            pl.BlockSpec((1, F), lambda i: (0, 0)),
            pl.BlockSpec((F, O), lambda i: (0, 0)),
            pl.BlockSpec((1, O), lambda i: (0, 0)),
        ],
        out_specs=pl.BlockSpec((B, O), lambda i: (0, 0)),
    )(x.astype(jnp.float32), wf1.T.astype(jnp.float32),
      bf1.reshape(1, F).astype(jnp.float32), wf2.T.astype(jnp.float32),
      bf2.reshape(1, O).astype(jnp.float32))


# ------------------------------ MYCNN forward -------------------------------- #

def mycnn_forward(x_nchw, params):
    """Forward pass matching MYCNN.forward. Input is NCHW (PyTorch layout)."""
    w1, b1, w2, b2, wf1, bf1, wf2, bf2 = params
    B = x_nchw.shape[0]
    Cf = w1.shape[0]
    x = conv_relu_pool(x_nchw, w1, b1)             # (B, Cf, 16, 16)
    x = conv_relu_pool(x, w2, b2)                  # (B, Cf,  8,  8)
    x = x.reshape(B, Cf * 8 * 8)                   # NCHW flatten == torch .view
    return fused_mlp(x, wf1, bf1, wf2, bf2)        # fc1+ReLU+fc2


def init_params(key, input_channels, conv_features, fc_features, output_size):
    ks = jax.random.split(key, 8)
    def nrm(k, shape, fan_in):
        return jax.random.normal(k, shape, jnp.float32) / jnp.sqrt(float(fan_in))
    w1 = nrm(ks[0], (conv_features, input_channels, 3, 3), input_channels * 9)
    b1 = nrm(ks[1], (conv_features,), input_channels * 9)
    w2 = nrm(ks[2], (conv_features, conv_features, 3, 3), conv_features * 9)
    b2 = nrm(ks[3], (conv_features,), conv_features * 9)
    fc1_in = conv_features * 8 * 8
    wf1 = nrm(ks[4], (fc_features, fc1_in), fc1_in)
    bf1 = nrm(ks[5], (fc_features,), fc1_in)
    wf2 = nrm(ks[6], (output_size, fc_features), fc_features)
    bf2 = nrm(ks[7], (output_size,), fc_features)
    return (w1, b1, w2, b2, wf1, bf1, wf2, bf2)


def reference_forward(x, params):
    """Pure-XLA reference of the same module (for a parity check)."""
    w1, b1, w2, b2, wf1, bf1, wf2, bf2 = params
    def conv(h, w, b):
        y = jax.lax.conv_general_dilated(
            h, w, window_strides=(1, 1), padding=((1, 1), (1, 1)),
            dimension_numbers=("NCHW", "OIHW", "NCHW"))
        return jax.nn.relu(y + b.reshape(1, -1, 1, 1))
    def pool(h):
        return jax.lax.reduce_window(h, -jnp.inf, jax.lax.max,
                                     (1, 1, 2, 2), (1, 1, 2, 2), "VALID")
    h = pool(conv(x, w1, b1))
    h = pool(conv(h, w2, b2))
    h = h.reshape(x.shape[0], -1)
    h = jax.nn.relu(h @ wf1.T + bf1)
    return h @ wf2.T + bf2


if __name__ == "__main__":
    key = jax.random.PRNGKey(0)
    k_x, k_p = jax.random.split(key)

    # fc1.in_features = conv_features * 8 * 8  =>  the module implies 32x32 input
    batch, input_channels = 2, 3
    conv_features, fc_features, output_size = 8, 32, 10
    H = W = 32

    x = jax.random.normal(k_x, (batch, input_channels, H, W), jnp.float32)
    params = init_params(k_p, input_channels, conv_features, fc_features,
                         output_size)

    fwd = jax.jit(mycnn_forward)
    y = jax.block_until_ready(fwd(x, params))
    assert y.shape == (batch, output_size), y.shape
    assert bool(jnp.all(jnp.isfinite(y)))

    # parity check against the pure-XLA reference (loose tol for MXU rounding)
    y_ref = jax.block_until_ready(reference_forward(x, params))
    assert jnp.allclose(y, y_ref, rtol=5e-2, atol=5e-2), \
        float(jnp.max(jnp.abs(y - y_ref)))

    print("KERNEL_OK")
</pallas_src>

<mosaic_0001>
module attributes {stable_mosaic.version = 11 : i64} {
  func.func @_conv_pool_kernel(%arg0: i32, %arg1: memref<1x4x3x362xf32, #tpu.memory_space<vmem>>, %arg2: memref<9x8x3xf32, #tpu.memory_space<vmem>>, %arg3: memref<8x1xf32, #tpu.memory_space<vmem>>, %arg4: memref<1x8x324xf32, #tpu.memory_space<vmem>>) attributes {dimension_semantics = [#tpu.dimension_semantics<parallel>], iteration_bounds = array<i64: 2>, scalar_prefetch = 0 : i64, scratch_operands = 0 : i64, tpu.core_type = #tpu.core_type<tc>, window_params = [{transform_indices = @transform_0, window_bounds = array<i64: 1, 4, 3, 362>}, {pipeline_mode = #tpu.pipeline_mode<synchronous>, transform_indices = @transform_1, window_bounds = array<i64: 9, 8, 3>}, {pipeline_mode = #tpu.pipeline_mode<synchronous>, transform_indices = @transform_2, window_bounds = array<i64: 8, 1>}, {transform_indices = @transform_3, window_bounds = array<i64: 1, 8, 324>}]} {
    %c0 = arith.constant 0 : index
    %c0_0 = arith.constant 0 : index
    %c0_1 = arith.constant 0 : index
    %c0_2 = arith.constant 0 : index
    %0 = vector.load %arg1[%c0, %c0_0, %c0_1, %c0_2] : memref<1x4x3x362xf32, #tpu.memory_space<vmem>>, vector<1x1x3x362xf32>
    %1 = vector.shape_cast %0 : vector<1x1x3x362xf32> to vector<3x362xf32>
    %c0_3 = arith.constant 0 : index
    %c1 = arith.constant 1 : index
    %c0_4 = arith.constant 0 : index
    %c0_5 = arith.constant 0 : index
    %2 = vector.load %arg1[%c0_3, %c1, %c0_4, %c0_5] : memref<1x4x3x362xf32, #tpu.memory_space<vmem>>, vector<1x1x3x362xf32>
    %3 = vector.shape_cast %2 : vector<1x1x3x362xf32> to vector<3x362xf32>
    %c0_6 = arith.constant 0 : index
    %c2 = arith.constant 2 : index
    %c0_7 = arith.constant 0 : index
    %c0_8 = arith.constant 0 : index
    %4 = vector.load %arg1[%c0_6, %c2, %c0_7, %c0_8] : memref<1x4x3x362xf32, #tpu.memory_space<vmem>>, vector<1x1x3x362xf32>
    %5 = vector.shape_cast %4 : vector<1x1x3x362xf32> to vector<3x362xf32>
    %c0_9 = arith.constant 0 : index
    %c3 = arith.constant 3 : index
    %c0_10 = arith.constant 0 : index
    %c0_11 = arith.constant 0 : index
    %6 = vector.load %arg1[%c0_9, %c3, %c0_10, %c0_11] : memref<1x4x3x362xf32, #tpu.memory_space<vmem>>, vector<1x1x3x362xf32>
    %7 = vector.shape_cast %6 : vector<1x1x3x362xf32> to vector<3x362xf32>
    %c0_12 = arith.constant 0 : index
    %c0_13 = arith.constant 0 : index
    %c0_14 = arith.constant 0 : index
    %8 = vector.load %arg2[%c0_12, %c0_13, %c0_14] : memref<9x8x3xf32, #tpu.memory_space<vmem>>, vector<1x8x3xf32>
    %9 = vector.shape_cast %8 : vector<1x8x3xf32> to vector<8x3xf32>
    %c1_15 = arith.constant 1 : index
    %c0_16 = arith.constant 0 : index
    %c0_17 = arith.constant 0 : index
    %10 = vector.load %arg2[%c1_15, %c0_16, %c0_17] : memref<9x8x3xf32, #tpu.memory_space<vmem>>, vector<1x8x3xf32>
    %11 = vector.shape_cast %10 : vector<1x8x3xf32> to vector<8x3xf32>
    %c2_18 = arith.constant 2 : index
    %c0_19 = arith.constant 0 : index
    %c0_20 = arith.constant 0 : index
    %12 = vector.load %arg2[%c2_18, %c0_19, %c0_20] : memref<9x8x3xf32, #tpu.memory_space<vmem>>, vector<1x8x3xf32>
    %13 = vector.shape_cast %12 : vector<1x8x3xf32> to vector<8x3xf32>
    %c3_21 = arith.constant 3 : index
    %c0_22 = arith.constant 0 : index
    %c0_23 = arith.constant 0 : index
    %14 = vector.load %arg2[%c3_21, %c0_22, %c0_23] : memref<9x8x3xf32, #tpu.memory_space<vmem>>, vector<1x8x3xf32>
    %15 = vector.shape_cast %14 : vector<1x8x3xf32> to vector<8x3xf32>
    %c4 = arith.constant 4 : index
    %c0_24 = arith.constant 0 : index
    %c0_25 = arith.constant 0 : index
    %16 = vector.load %arg2[%c4, %c0_24, %c0_25] : memref<9x8x3xf32, #tpu.memory_space<vmem>>, vector<1x8x3xf32>
    %17 = vector.shape_cast %16 : vector<1x8x3xf32> to vector<8x3xf32>
    %c5 = arith.constant 5 : index
    %c0_26 = arith.constant 0 : index
    %c0_27 = arith.constant 0 : index
    %18 = vector.load %arg2[%c5, %c0_26, %c0_27] : memref<9x8x3xf32, #tpu.memory_space<vmem>>, vector<1x8x3xf32>
    %19 = vector.shape_cast %18 : vector<1x8x3xf32> to vector<8x3xf32>
    %c6 = arith.constant 6 : index
    %c0_28 = arith.constant 0 : index
    %c0_29 = arith.constant 0 : index
    %20 = vector.load %arg2[%c6, %c0_28, %c0_29] : memref<9x8x3xf32, #tpu.memory_space<vmem>>, vector<1x8x3xf32>
    %21 = vector.shape_cast %20 : vector<1x8x3xf32> to vector<8x3xf32>
    %c7 = arith.constant 7 : index
    %c0_30 = arith.constant 0 : index
    %c0_31 = arith.constant 0 : index
    %22 = vector.load %arg2[%c7, %c0_30, %c0_31] : memref<9x8x3xf32, #tpu.memory_space<vmem>>, vector<1x8x3xf32>
    %23 = vector.shape_cast %22 : vector<1x8x3xf32> to vector<8x3xf32>
    %c8 = arith.constant 8 : index
    %c0_32 = arith.constant 0 : index
    %c0_33 = arith.constant 0 : index
    %24 = vector.load %arg2[%c8, %c0_32, %c0_33] : memref<9x8x3xf32, #tpu.memory_space<vmem>>, vector<1x8x3xf32>
    %25 = vector.shape_cast %24 : vector<1x8x3xf32> to vector<8x3xf32>
    %c0_34 = arith.constant 0 : index
    %c0_35 = arith.constant 0 : index
    %26 = vector.load %arg3[%c0_34, %c0_35] : memref<8x1xf32, #tpu.memory_space<vmem>>, vector<8x1xf32>
    %cst = arith.constant 0.000000e+00 : f32
    %27 = vector.broadcast %cst : f32 to vector<8x324xf32>
    %28 = vector.extract_strided_slice %7 {offsets = [0, 0], sizes = [3, 324], strides = [1, 1]} : vector<3x362xf32> to vector<3x324xf32>
    %cst_36 = arith.constant dense<0.000000e+00> : vector<8x324xf32>
    %29 = tpu.matmul %9, %28, %cst_36 {dimension_numbers = #tpu.dot_dimension_numbers<[1], [0], [0], [1], [0, 0, 1, 1], [], []>} : vector<8x3xf32>, vector<3x324xf32>, vector<8x324xf32> -> vector<8x324xf32>
    %30 = arith.addf %27, %29 : vector<8x324xf32>
    %31 = vector.extract_strided_slice %5 {offsets = [0, 1], sizes = [3, 324], strides = [1, 1]} : vector<3x362xf32> to vector<3x324xf32>
    %cst_37 = arith.constant dense<0.000000e+00> : vector<8x324xf32>
    %32 = tpu.matmul %11, %31, %cst_37 {dimension_numbers = #tpu.dot_dimension_numbers<[1], [0], [0], [1], [0, 0, 1, 1], [], []>} : vector<8x3xf32>, vector<3x324xf32>, vector<8x324xf32> -> vector<8x324xf32>
    %33 = arith.addf %30, %32 : vector<8x324xf32>
    %34 = vector.extract_strided_slice %7 {offsets = [0, 1], sizes = [3, 324], strides = [1, 1]} : vector<3x362xf32> to vector<3x324xf32>
    %cst_38 = arith.constant dense<0.000000e+00> : vector<8x324xf32>
    %35 = tpu.matmul %13, %34, %cst_38 {dimension_numbers = #tpu.dot_dimension_numbers<[1], [0], [0], [1], [0, 0, 1, 1], [], []>} : vector<8x3xf32>, vector<3x324xf32>, vector<8x324xf32> -> vector<8x324xf32>
    %36 = arith.addf %33, %35 : vector<8x324xf32>
    %37 = vector.extract_strided_slice %3 {offsets = [0, 18], sizes = [3, 324], strides = [1, 1]} : vector<3x362xf32> to vector<3x324xf32>
    %cst_39 = arith.constant dense<0.000000e+00> : vector<8x324xf32>
    %38 = tpu.matmul %15, %37, %cst_39 {dimension_numbers = #tpu.dot_dimension_numbers<[1], [0], [0], [1], [0, 0, 1, 1], [], []>} : vector<8x3xf32>, vector<3x324xf32>, vector<8x324xf32> -> vector<8x324xf32>
    %39 = arith.addf %36, %38 : vector<8x324xf32>
    %40 = vector.extract_strided_slice %1 {offsets = [0, 19], sizes = [3, 324], strides = [1, 1]} : vector<3x362xf32> to vector<3x324xf32>
    %cst_40 = arith.constant dense<0.000000e+00> : vector<8x324xf32>
    %41 = tpu.matmul %17, %40, %cst_40 {dimension_numbers = #tpu.dot_dimension_numbers<[1], [0], [0], [1], [0, 0, 1, 1], [], []>} : vector<8x3xf32>, vector<3x324xf32>, vector<8x324xf32> -> vector<8x324xf32>
    %42 = arith.addf %39, %41 : vector<8x324xf32>
    %43 = vector.extract_strided_slice %3 {offsets = [0, 19], sizes = [3, 324], strides = [1, 1]} : vector<3x362xf32> to vector<3x324xf32>
    %cst_41 = arith.constant dense<0.000000e+00> : vector<8x324xf32>
    %44 = tpu.matmul %19, %43, %cst_41 {dimension_numbers = #tpu.dot_dimension_numbers<[1], [0], [0], [1], [0, 0, 1, 1], [], []>} : vector<8x3xf32>, vector<3x324xf32>, vector<8x324xf32> -> vector<8x324xf32>
    %45 = arith.addf %42, %44 : vector<8x324xf32>
    %46 = vector.extract_strided_slice %7 {offsets = [0, 18], sizes = [3, 324], strides = [1, 1]} : vector<3x362xf32> to vector<3x324xf32>
    %cst_42 = arith.constant dense<0.000000e+00> : vector<8x324xf32>
    %47 = tpu.matmul %21, %46, %cst_42 {dimension_numbers = #tpu.dot_dimension_numbers<[1], [0], [0], [1], [0, 0, 1, 1], [], []>} : vector<8x3xf32>, vector<3x324xf32>, vector<8x324xf32> -> vector<8x324xf32>
    %48 = arith.addf %45, %47 : vector<8x324xf32>
    %49 = vector.extract_strided_slice %5 {offsets = [0, 19], sizes = [3, 324], strides = [1, 1]} : vector<3x362xf32> to vector<3x324xf32>
    %cst_43 = arith.constant dense<0.000000e+00> : vector<8x324xf32>
    %50 = tpu.matmul %23, %49, %cst_43 {dimension_numbers = #tpu.dot_dimension_numbers<[1], [0], [0], [1], [0, 0, 1, 1], [], []>} : vector<8x3xf32>, vector<3x324xf32>, vector<8x324xf32> -> vector<8x324xf32>
    %51 = arith.addf %48, %50 : vector<8x324xf32>
    %52 = vector.extract_strided_slice %7 {offsets = [0, 19], sizes = [3, 324], strides = [1, 1]} : vector<3x362xf32> to vector<3x324xf32>
    %cst_44 = arith.constant dense<0.000000e+00> : vector<8x324xf32>
    %53 = tpu.matmul %25, %52, %cst_44 {dimension_numbers = #tpu.dot_dimension_numbers<[1], [0], [0], [1], [0, 0, 1, 1], [], []>} : vector<8x3xf32>, vector<3x324xf32>, vector<8x324xf32> -> vector<8x324xf32>
    %54 = arith.addf %51, %53 : vector<8x324xf32>
    %cst_45 = arith.constant 0.000000e+00 : f32
    %55 = vector.broadcast %cst_45 : f32 to vector<8x324xf32>
    %56 = vector.extract_strided_slice %5 {offsets = [0, 1], sizes = [3, 324], strides = [1, 1]} : vector<3x362xf32> to vector<3x324xf32>
    %cst_46 = arith.constant dense<0.000000e+00> : vector<8x324xf32>
    %57 = tpu.matmul %9, %56, %cst_46 {dimension_numbers = #tpu.dot_dimension_numbers<[1], [0], [0], [1], [0, 0, 1, 1], [], []>} : vector<8x3xf32>, vector<3x324xf32>, vector<8x324xf32> -> vector<8x324xf32>
    %58 = arith.addf %55, %57 : vector<8x324xf32>
    %59 = vector.extract_strided_slice %7 {offsets = [0, 1], sizes = [3, 324], strides = [1, 1]} : vector<3x362xf32> to vector<3x324xf32>
    %cst_47 = arith.constant dense<0.000000e+00> : vector<8x324xf32>
    %60 = tpu.matmul %11, %59, %cst_47 {dimension_numbers = #tpu.dot_dimension_numbers<[1], [0], [0], [1], [0, 0, 1, 1], [], []>} : vector<8x3xf32>, vector<3x324xf32>, vector<8x324xf32> -> vector<8x324xf32>
    %61 = arith.addf %58, %60 : vector<8x324xf32>
    %62 = vector.extract_strided_slice %5 {offsets = [0, 2], sizes = [3, 324], strides = [1, 1]} : vector<3x362xf32> to vector<3x324xf32>
    %cst_48 = arith.constant dense<0.000000e+00> : vector<8x324xf32>
    %63 = tpu.matmul %13, %62, %cst_48 {dimension_numbers = #tpu.dot_dimension_numbers<[1], [0], [0], [1], [0, 0, 1, 1], [], []>} : vector<8x3xf32>, vector<3x324xf32>, vector<8x324xf32> -> vector<8x324xf32>
    %64 = arith.addf %61, %63 : vector<8x324xf32>
    %65 = vector.extract_strided_slice %1 {offsets = [0, 19], sizes = [3, 324], strides = [1, 1]} : vector<3x362xf32> to vector<3x324xf32>
    %cst_49 = arith.constant dense<0.000000e+00> : vector<8x324xf32>
    %66 = tpu.matmul %15, %65, %cst_49 {dimension_numbers = #tpu.dot_dimension_numbers<[1], [0], [0], [1], [0, 0, 1, 1], [], []>} : vector<8x3xf32>, vector<3x324xf32>, vector<8x324xf32> -> vector<8x324xf32>
    %67 = arith.addf %64, %66 : vector<8x324xf32>
    %68 = vector.extract_strided_slice %3 {offsets = [0, 19], sizes = [3, 324], strides = [1, 1]} : vector<3x362xf32> to vector<3x324xf32>
    %cst_50 = arith.constant dense<0.000000e+00> : vector<8x324xf32>
    %69 = tpu.matmul %17, %68, %cst_50 {dimension_numbers = #tpu.dot_dimension_numbers<[1], [0], [0], [1], [0, 0, 1, 1], [], []>} : vector<8x3xf32>, vector<3x324xf32>, vector<8x324xf32> -> vector<8x324xf32>
    %70 = arith.addf %67, %69 : vector<8x324xf32>
    %71 = vector.extract_strided_slice %1 {offsets = [0, 20], sizes = [3, 324], strides = [1, 1]} : vector<3x362xf32> to vector<3x324xf32>
    %cst_51 = arith.constant dense<0.000000e+00> : vector<8x324xf32>
    %72 = tpu.matmul %19, %71, %cst_51 {dimension_numbers = #tpu.dot_dimension_numbers<[1], [0], [0], [1], [0, 0, 1, 1], [], []>} : vector<8x3xf32>, vector<3x324xf32>, vector<8x324xf32> -> vector<8x324xf32>
    %73 = arith.addf %70, %72 : vector<8x324xf32>
    %74 = vector.extract_strided_slice %5 {offsets = [0, 19], sizes = [3, 324], strides = [1, 1]} : vector<3x362xf32> to vector<3x324xf32>
    %cst_52 = arith.constant dense<0.000000e+00> : vector<8x324xf32>
    %75 = tpu.matmul %21, %74, %cst_52 {dimension_numbers = #tpu.dot_dimension_numbers<[1], [0], [0], [1], [0, 0, 1, 1], [], []>} : vector<8x3xf32>, vector<3x324xf32>, vector<8x324xf32> -> vector<8x324xf32>
    %76 = arith.addf %73, %75 : vector<8x324xf32>
    %77 = vector.extract_strided_slice %7 {offsets = [0, 19], sizes = [3, 324], strides = [1, 1]} : vector<3x362xf32> to vector<3x324xf32>
    %cst_53 = arith.constant dense<0.000000e+00> : vector<8x324xf32>
    %78 = tpu.matmul %23, %77, %cst_53 {dimension_numbers = #tpu.dot_dimension_numbers<[1], [0], [0], [1], [0, 0, 1, 1], [], []>} : vector<8x3xf32>, vector<3x324xf32>, vector<8x324xf32> -> vector<8x324xf32>
    %79 = arith.addf %76, %78 : vector<8x324xf32>
    %80 = vector.extract_strided_slice %5 {offsets = [0, 20], sizes = [3, 324], strides = [1, 1]} : vector<3x362xf32> to vector<3x324xf32>
    %cst_54 = arith.constant dense<0.000000e+00> : vector<8x324xf32>
    %81 = tpu.matmul %25, %80, %cst_54 {dimension_numbers = #tpu.dot_dimension_numbers<[1], [0], [0], [1], [0, 0, 1, 1], [], []>} : vector<8x3xf32>, vector<3x324xf32>, vector<8x324xf32> -> vector<8x324xf32>
    %82 = arith.addf %79, %81 : vector<8x324xf32>
    %83 = arith.maximumf %54, %82 : vector<8x324xf32>
    %cst_55 = arith.constant 0.000000e+00 : f32
    %84 = vector.broadcast %cst_55 : f32 to vector<8x324xf32>
    %85 = vector.extract_strided_slice %3 {offsets = [0, 18], sizes = [3, 324], strides = [1, 1]} : vector<3x362xf32> to vector<3x324xf32>
    %cst_56 = arith.constant dense<0.000000e+00> : vector<8x324xf32>
    %86 = tpu.matmul %9, %85, %cst_56 {dimension_numbers = #tpu.dot_dimension_numbers<[1], [0], [0], [1], [0, 0, 1, 1], [], []>} : vector<8x3xf32>, vector<3x324xf32>, vector<8x324xf32> -> vector<8x324xf32>
    %87 = arith.addf %84, %86 : vector<8x324xf32>
    %88 = vector.extract_strided_slice %1 {offsets = [0, 19], sizes = [3, 324], strides = [1, 1]} : vector<3x362xf32> to vector<3x324xf32>
    %cst_57 = arith.constant dense<0.000000e+00> : vector<8x324xf32>
    %89 = tpu.matmul %11, %88, %cst_57 {dimension_numbers = #tpu.dot_dimension_numbers<[1], [0], [0], [1], [0, 0, 1, 1], [], []>} : vector<8x3xf32>, vector<3x324xf32>, vector<8x324xf32> -> vector<8x324xf32>
    %90 = arith.addf %87, %89 : vector<8x324xf32>
    %91 = vector.extract_strided_slice %3 {offsets = [0, 19], sizes = [3, 324], strides = [1, 1]} : vector<3x362xf32> to vector<3x324xf32>
    %cst_58 = arith.constant dense<0.000000e+00> : vector<8x324xf32>
    %92 = tpu.matmul %13, %91, %cst_58 {dimension_numbers = #tpu.dot_dimension_numbers<[1], [0], [0], [1], [0, 0, 1, 1], [], []>} : vector<8x3xf32>, vector<3x324xf32>, vector<8x324xf32> -> vector<8x324xf32>
    %93 = arith.addf %90, %92 : vector<8x324xf32>
    %94 = vector.extract_strided_slice %7 {offsets = [0, 18], sizes = [3, 324], strides = [1, 1]} : vector<3x362xf32> to vector<3x324xf32>
    %cst_59 = arith.constant dense<0.000000e+00> : vector<8x324xf32>
    %95 = tpu.matmul %15, %94, %cst_59 {dimension_numbers = #tpu.dot_dimension_numbers<[1], [0], [0], [1], [0, 0, 1, 1], [], []>} : vector<8x3xf32>, vector<3x324xf32>, vector<8x324xf32> -> vector<8x324xf32>
    %96 = arith.addf %93, %95 : vector<8x324xf32>
    %97 = vector.extract_strided_slice %5 {offsets = [0, 19], sizes = [3, 324], strides = [1, 1]} : vector<3x362xf32> to vector<3x324xf32>
    %cst_60 = arith.constant dense<0.000000e+00> : vector<8x324xf32>
    %98 = tpu.matmul %17, %97, %cst_60 {dimension_numbers = #tpu.dot_dimension_numbers<[1], [0], [0], [1], [0, 0, 1, 1], [], []>} : vector<8x3xf32>, vector<3x324xf32>, vector<8x324xf32> -> vector<8x324xf32>
    %99 = arith.addf %96, %98 : vector<8x324xf32>
    %100 = vector.extract_strided_slice %7 {offsets = [0, 19], sizes = [3, 324], strides = [1, 1]} : vector<3x362xf32> to vector<3x324xf32>
    %cst_61 = arith.constant dense<0.000000e+00> : vector<8x324xf32>
    %101 = tpu.matmul %19, %100, %cst_61 {dimension_numbers = #tpu.dot_dimension_numbers<[1], [0], [0], [1], [0, 0, 1, 1], [], []>} : vector<8x3xf32>, vector<3x324xf32>, vector<8x324xf32> -> vector<8x324xf32>
    %102 = arith.addf %99, %101 : vector<8x324xf32>
    %103 = vector.extract_strided_slice %3 {offsets = [0, 36], sizes = [3, 324], strides = [1, 1]} : vector<3x362xf32> to vector<3x324xf32>
    %cst_62 = arith.constant dense<0.000000e+00> : vector<8x324xf32>
    %104 = tpu.matmul %21, %103, %cst_62 {dimension_numbers = #tpu.dot_dimension_numbers<[1], [0], [0], [1], [0, 0, 1, 1], [], []>} : vector<8x3xf32>, vector<3x324xf32>, vector<8x324xf32> -> vector<8x324xf32>
    %105 = arith.addf %102, %104 : vector<8x324xf32>
    %106 = vector.extract_strided_slice %1 {offsets = [0, 37], sizes = [3, 324], strides = [1, 1]} : vector<3x362xf32> to vector<3x324xf32>
    %cst_63 = arith.constant dense<0.000000e+00> : vector<8x324xf32>
    %107 = tpu.matmul %23, %106, %cst_63 {dimension_numbers = #tpu.dot_dimension_numbers<[1], [0], [0], [1], [0, 0, 1, 1], [], []>} : vector<8x3xf32>, vector<3x324xf32>, vector<8x324xf32> -> vector<8x324xf32>
    %108 = arith.addf %105, %107 : vector<8x324xf32>
    %109 = vector.extract_strided_slice %3 {offsets = [0, 37], sizes = [3, 324], strides = [1, 1]} : vector<3x362xf32> to vector<3x324xf32>
    %cst_64 = arith.constant dense<0.000000e+00> : vector<8x324xf32>
    %110 = tpu.matmul %25, %109, %cst_64 {dimension_numbers = #tpu.dot_dimension_numbers<[1], [0], [0], [1], [0, 0, 1, 1], [], []>} : vector<8x3xf32>, vector<3x324xf32>, vector<8x324xf32> -> vector<8x324xf32>
    %111 = arith.addf %108, %110 : vector<8x324xf32>
    %112 = arith.maximumf %83, %111 : vector<8x324xf32>
    %cst_65 = arith.constant 0.000000e+00 : f32
    %113 = vector.broadcast %cst_65 : f32 to vector<8x324xf32>
    %114 = vector.extract_strided_slice %1 {offsets = [0, 19], sizes = [3, 324], strides = [1, 1]} : vector<3x362xf32> to vector<3x324xf32>
    %cst_66 = arith.constant dense<0.000000e+00> : vector<8x324xf32>
    %115 = tpu.matmul %9, %114, %cst_66 {dimension_numbers = #tpu.dot_dimension_numbers<[1], [0], [0], [1], [0, 0, 1, 1], [], []>} : vector<8x3xf32>, vector<3x324xf32>, vector<8x324xf32> -> vector<8x324xf32>
    %116 = arith.addf %113, %115 : vector<8x324xf32>
    %117 = vector.extract_strided_slice %3 {offsets = [0, 19], sizes = [3, 324], strides = [1, 1]} : vector<3x362xf32> to vector<3x324xf32>
    %cst_67 = arith.constant dense<0.000000e+00> : vector<8x324xf32>
    %118 = tpu.matmul %11, %117, %cst_67 {dimension_numbers = #tpu.dot_dimension_numbers<[1], [0], [0], [1], [0, 0, 1, 1], [], []>} : vector<8x3xf32>, vector<3x324xf32>, vector<8x324xf32> -> vector<8x324xf32>
    %119 = arith.addf %116, %118 : vector<8x324xf32>
    %120 = vector.extract_strided_slice %1 {offsets = [0, 20], sizes = [3, 324], strides = [1, 1]} : vector<3x362xf32> to vector<3x324xf32>
    %cst_68 = arith.constant dense<0.000000e+00> : vector<8x324xf32>
    %121 = tpu.matmul %13, %120, %cst_68 {dimension_numbers = #tpu.dot_dimension_numbers<[1], [0], [0], [1], [0, 0, 1, 1], [], []>} : vector<8x3xf32>, vector<3x324xf32>, vector<8x324xf32> -> vector<8x324xf32>
    %122 = arith.addf %119, %121 : vector<8x324xf32>
    %123 = vector.extract_strided_slice %5 {offsets = [0, 19], sizes = [3, 324], strides = [1, 1]} : vector<3x362xf32> to vector<3x324xf32>
    %cst_69 = arith.constant dense<0.000000e+00> : vector<8x324xf32>
    %124 = tpu.matmul %15, %123, %cst_69 {dimension_numbers = #tpu.dot_dimension_numbers<[1], [0], [0], [1], [0, 0, 1, 1], [], []>} : vector<8x3xf32>, vector<3x324xf32>, vector<8x324xf32> -> vector<8x324xf32>
    %125 = arith.addf %122, %124 : vector<8x324xf32>
    %126 = vector.extract_strided_slice %7 {offsets = [0, 19], sizes = [3, 324], strides = [1, 1]} : vector<3x362xf32> to vector<3x324xf32>
    %cst_70 = arith.constant dense<0.000000e+00> : vector<8x324xf32>
    %127 = tpu.matmul %17, %126, %cst_70 {dimension_numbers = #tpu.dot_dimension_numbers<[1], [0], [0], [1], [0, 0, 1, 1], [], []>} : vector<8x3xf32>, vector<3x324xf32>, vector<8x324xf32> -> vector<8x324xf32>
    %128 = arith.addf %125, %127 : vector<8x324xf32>
    %129 = vector.extract_strided_slice %5 {offsets = [0, 20], sizes = [3, 324], strides = [1, 1]} : vector<3x362xf32> to vector<3x324xf32>
    %cst_71 = arith.constant dense<0.000000e+00> : vector<8x324xf32>
    %130 = tpu.matmul %19, %129, %cst_71 {dimension_numbers = #tpu.dot_dimension_numbers<[1], [0], [0], [1], [0, 0, 1, 1], [], []>} : vector<8x3xf32>, vector<3x324xf32>, vector<8x324xf32> -> vector<8x324xf32>
    %131 = arith.addf %128, %130 : vector<8x324xf32>
    %132 = vector.extract_strided_slice %1 {offsets = [0, 37], sizes = [3, 324], strides = [1, 1]} : vector<3x362xf32> to vector<3x324xf32>
    %cst_72 = arith.constant dense<0.000000e+00> : vector<8x324xf32>
    %133 = tpu.matmul %21, %132, %cst_72 {dimension_numbers = #tpu.dot_dimension_numbers<[1], [0], [0], [1], [0, 0, 1, 1], [], []>} : vector<8x3xf32>, vector<3x324xf32>, vector<8x324xf32> -> vector<8x324xf32>
    %134 = arith.addf %131, %133 : vector<8x324xf32>
    %135 = vector.extract_strided_slice %3 {offsets = [0, 37], sizes = [3, 324], strides = [1, 1]} : vector<3x362xf32> to vector<3x324xf32>
    %cst_73 = arith.constant dense<0.000000e+00> : vector<8x324xf32>
    %136 = tpu.matmul %23, %135, %cst_73 {dimension_numbers = #tpu.dot_dimension_numbers<[1], [0], [0], [1], [0, 0, 1, 1], [], []>} : vector<8x3xf32>, vector<3x324xf32>, vector<8x324xf32> -> vector<8x324xf32>
    %137 = arith.addf %134, %136 : vector<8x324xf32>
    %138 = vector.extract_strided_slice %1 {offsets = [0, 38], sizes = [3, 324], strides = [1, 1]} : vector<3x362xf32> to vector<3x324xf32>
    %cst_74 = arith.constant dense<0.000000e+00> : vector<8x324xf32>
    %139 = tpu.matmul %25, %138, %cst_74 {dimension_numbers = #tpu.dot_dimension_numbers<[1], [0], [0], [1], [0, 0, 1, 1], [], []>} : vector<8x3xf32>, vector<3x324xf32>, vector<8x324xf32> -> vector<8x324xf32>
    %140 = arith.addf %137, %139 : vector<8x324xf32>
    %141 = arith.maximumf %112, %140 : vector<8x324xf32>
    %142 = vector.broadcast %26 : vector<8x1xf32> to vector<8x324xf32>
    %143 = arith.addf %141, %142 : vector<8x324xf32>
    %cst_75 = arith.constant 0.000000e+00 : f32
    %144 = vector.broadcast %cst_75 : f32 to vector<8x324xf32>
    %145 = arith.maximumf %143, %144 : vector<8x324xf32>
    %c0_76 = arith.constant 0 : index
    %c0_77 = arith.constant 0 : index
    %c0_78 = arith.constant 0 : index
    %146 = vector.load %arg4[%c0_76, %c0_77, %c0_78] : memref<1x8x324xf32, #tpu.memory_space<vmem>>, vector<1x8x324xf32>
    %147 = vector.shape_cast %146 : vector<1x8x324xf32> to vector<8x324xf32>
    %148 = vector.shape_cast %145 : vector<8x324xf32> to vector<1x8x324xf32>
    tpu.vector_store %arg4[%c0_76, %c0_77, %c0_78], %148 {strides = array<i32>} : memref<1x8x324xf32, #tpu.memory_space<vmem>>, vector<1x8x324xf32>,
    return
  }
  func.func @transform_0(%arg0: i32) -> (i32, i32, i32, i32) {
    %c0_i32 = arith.constant 0 : i32
    %c0_i32_0 = arith.constant 0 : i32
    %c0_i32_1 = arith.constant 0 : i32
    %c0_i32_2 = arith.constant 0 : i32
    return %arg0, %c0_i32, %c0_i32_0, %c0_i32_1 : i32, i32, i32, i32
  }
  func.func @transform_1(%arg0: i32) -> (i32, i32, i32) {
    %c0_i32 = arith.constant 0 : i32
    %c0_i32_0 = arith.constant 0 : i32
    %c0_i32_1 = arith.constant 0 : i32
    %c0_i32_2 = arith.constant 0 : i32
    return %c0_i32, %c0_i32_0, %c0_i32_1 : i32, i32, i32
  }
  func.func @transform_2(%arg0: i32) -> (i32, i32) {
    %c0_i32 = arith.constant 0 : i32
    %c0_i32_0 = arith.constant 0 : i32
    %c0_i32_1 = arith.constant 0 : i32
    return %c0_i32, %c0_i32_0 : i32, i32
  }
  func.func @transform_3(%arg0: i32) -> (i32, i32, i32) {
    %c0_i32 = arith.constant 0 : i32
    %c0_i32_0 = arith.constant 0 : i32
    %c0_i32_1 = arith.constant 0 : i32
    return %arg0, %c0_i32, %c0_i32_0 : i32, i32, i32
  }
}

module attributes {stable_mosaic.version = 11 : i64} {
  func.func @_conv_pool_kernel(%arg0: i32, %arg1: memref<1x4x8x122xf32, #tpu.memory_space<vmem>>, %arg2: memref<9x8x8xf32, #tpu.memory_space<vmem>>, %arg3: memref<8x1xf32, #tpu.memory_space<vmem>>, %arg4: memref<1x8x100xf32, #tpu.memory_space<vmem>>) attributes {dimension_semantics = [#tpu.dimension_semantics<parallel>], iteration_bounds = array<i64: 2>, scalar_prefetch = 0 : i64, scratch_operands = 0 : i64, tpu.core_type = #tpu.core_type<tc>, window_params = [{transform_indices = @transform_0, window_bounds = array<i64: 1, 4, 8, 122>}, {pipeline_mode = #tpu.pipeline_mode<synchronous>, transform_indices = @transform_1, window_bounds = array<i64: 9, 8, 8>}, {pipeline_mode = #tpu.pipeline_mode<synchronous>, transform_indices = @transform_2, window_bounds = array<i64: 8, 1>}, {transform_indices = @transform_3, window_bounds = array<i64: 1, 8, 100>}]} {
    %c0 = arith.constant 0 : index
    %c0_0 = arith.constant 0 : index
    %c0_1 = arith.constant 0 : index
    %c0_2 = arith.constant 0 : index
    %0 = vector.load %arg1[%c0, %c0_0, %c0_1, %c0_2] : memref<1x4x8x122xf32, #tpu.memory_space<vmem>>, vector<1x1x8x122xf32>
    %1 = vector.shape_cast %0 : vector<1x1x8x122xf32> to vector<8x122xf32>
    %c0_3 = arith.constant 0 : index
    %c1 = arith.constant 1 : index
    %c0_4 = arith.constant 0 : index
    %c0_5 = arith.constant 0 : index
    %2 = vector.load %arg1[%c0_3, %c1, %c0_4, %c0_5] : memref<1x4x8x122xf32, #tpu.memory_space<vmem>>, vector<1x1x8x122xf32>
    %3 = vector.shape_cast %2 : vector<1x1x8x122xf32> to vector<8x122xf32>
    %c0_6 = arith.constant 0 : index
    %c2 = arith.constant 2 : index
    %c0_7 = arith.constant 0 : index
    %c0_8 = arith.constant 0 : index
    %4 = vector.load %arg1[%c0_6, %c2, %c0_7, %c0_8] : memref<1x4x8x122xf32, #tpu.memory_space<vmem>>, vector<1x1x8x122xf32>
    %5 = vector.shape_cast %4 : vector<1x1x8x122xf32> to vector<8x122xf32>
    %c0_9 = arith.constant 0 : index
    %c3 = arith.constant 3 : index
    %c0_10 = arith.constant 0 : index
    %c0_11 = arith.constant 0 : index
    %6 = vector.load %arg1[%c0_9, %c3, %c0_10, %c0_11] : memref<1x4x8x122xf32, #tpu.memory_space<vmem>>, vector<1x1x8x122xf32>
    %7 = vector.shape_cast %6 : vector<1x1x8x122xf32> to vector<8x122xf32>
    %c0_12 = arith.constant 0 : index
    %c0_13 = arith.constant 0 : index
    %c0_14 = arith.constant 0 : index
    %8 = vector.load %arg2[%c0_12, %c0_13, %c0_14] : memref<9x8x8xf32, #tpu.memory_space<vmem>>, vector<1x8x8xf32>
    %9 = vector.shape_cast %8 : vector<1x8x8xf32> to vector<8x8xf32>
    %c1_15 = arith.constant 1 : index
    %c0_16 = arith.constant 0 : index
    %c0_17 = arith.constant 0 : index
    %10 = vector.load %arg2[%c1_15, %c0_16, %c0_17] : memref<9x8x8xf32, #tpu.memory_space<vmem>>, vector<1x8x8xf32>
    %11 = vector.shape_cast %10 : vector<1x8x8xf32> to vector<8x8xf32>
    %c2_18 = arith.constant 2 : index
    %c0_19 = arith.constant 0 : index
    %c0_20 = arith.constant 0 : index
    %12 = vector.load %arg2[%c2_18, %c0_19, %c0_20] : memref<9x8x8xf32, #tpu.memory_space<vmem>>, vector<1x8x8xf32>
    %13 = vector.shape_cast %12 : vector<1x8x8xf32> to vector<8x8xf32>
    %c3_21 = arith.constant 3 : index
    %c0_22 = arith.constant 0 : index
    %c0_23 = arith.constant 0 : index
    %14 = vector.load %arg2[%c3_21, %c0_22, %c0_23] : memref<9x8x8xf32, #tpu.memory_space<vmem>>, vector<1x8x8xf32>
    %15 = vector.shape_cast %14 : vector<1x8x8xf32> to vector<8x8xf32>
    %c4 = arith.constant 4 : index
    %c0_24 = arith.constant 0 : index
    %c0_25 = arith.constant 0 : index
    %16 = vector.load %arg2[%c4, %c0_24, %c0_25] : memref<9x8x8xf32, #tpu.memory_space<vmem>>, vector<1x8x8xf32>
    %17 = vector.shape_cast %16 : vector<1x8x8xf32> to vector<8x8xf32>
    %c5 = arith.constant 5 : index
    %c0_26 = arith.constant 0 : index
    %c0_27 = arith.constant 0 : index
    %18 = vector.load %arg2[%c5, %c0_26, %c0_27] : memref<9x8x8xf32, #tpu.memory_space<vmem>>, vector<1x8x8xf32>
    %19 = vector.shape_cast %18 : vector<1x8x8xf32> to vector<8x8xf32>
    %c6 = arith.constant 6 : index
    %c0_28 = arith.constant 0 : index
    %c0_29 = arith.constant 0 : index
    %20 = vector.load %arg2[%c6, %c0_28, %c0_29] : memref<9x8x8xf32, #tpu.memory_space<vmem>>, vector<1x8x8xf32>
    %21 = vector.shape_cast %20 : vector<1x8x8xf32> to vector<8x8xf32>
    %c7 = arith.constant 7 : index
    %c0_30 = arith.constant 0 : index
    %c0_31 = arith.constant 0 : index
    %22 = vector.load %arg2[%c7, %c0_30, %c0_31] : memref<9x8x8xf32, #tpu.memory_space<vmem>>, vector<1x8x8xf32>
    %23 = vector.shape_cast %22 : vector<1x8x8xf32> to vector<8x8xf32>
    %c8 = arith.constant 8 : index
    %c0_32 = arith.constant 0 : index
    %c0_33 = arith.constant 0 : index
    %24 = vector.load %arg2[%c8, %c0_32, %c0_33] : memref<9x8x8xf32, #tpu.memory_space<vmem>>, vector<1x8x8xf32>
    %25 = vector.shape_cast %24 : vector<1x8x8xf32> to vector<8x8xf32>
    %c0_34 = arith.constant 0 : index
    %c0_35 = arith.constant 0 : index
    %26 = vector.load %arg3[%c0_34, %c0_35] : memref<8x1xf32, #tpu.memory_space<vmem>>, vector<8x1xf32>
    %cst = arith.constant 0.000000e+00 : f32
    %27 = vector.broadcast %cst : f32 to vector<8x100xf32>
    %28 = vector.extract_strided_slice %7 {offsets = [0, 0], sizes = [8, 100], strides = [1, 1]} : vector<8x122xf32> to vector<8x100xf32>
    %cst_36 = arith.constant dense<0.000000e+00> : vector<8x100xf32>
    %29 = tpu.matmul %9, %28, %cst_36 {dimension_numbers = #tpu.dot_dimension_numbers<[1], [0], [0], [1], [0, 0, 1, 1], [], []>} : vector<8x8xf32>, vector<8x100xf32>, vector<8x100xf32> -> vector<8x100xf32>
    %30 = arith.addf %27, %29 : vector<8x100xf32>
    %31 = vector.extract_strided_slice %5 {offsets = [0, 1], sizes = [8, 100], strides = [1, 1]} : vector<8x122xf32> to vector<8x100xf32>
    %cst_37 = arith.constant dense<0.000000e+00> : vector<8x100xf32>
    %32 = tpu.matmul %11, %31, %cst_37 {dimension_numbers = #tpu.dot_dimension_numbers<[1], [0], [0], [1], [0, 0, 1, 1], [], []>} : vector<8x8xf32>, vector<8x100xf32>, vector<8x100xf32> -> vector<8x100xf32>
    %33 = arith.addf %30, %32 : vector<8x100xf32>
    %34 = vector.extract_strided_slice %7 {offsets = [0, 1], sizes = [8, 100], strides = [1, 1]} : vector<8x122xf32> to vector<8x100xf32>
    %cst_38 = arith.constant dense<0.000000e+00> : vector<8x100xf32>
    %35 = tpu.matmul %13, %34, %cst_38 {dimension_numbers = #tpu.dot_dimension_numbers<[1], [0], [0], [1], [0, 0, 1, 1], [], []>} : vector<8x8xf32>, vector<8x100xf32>, vector<8x100xf32> -> vector<8x100xf32>
    %36 = arith.addf %33, %35 : vector<8x100xf32>
    %37 = vector.extract_strided_slice %3 {offsets = [0, 10], sizes = [8, 100], strides = [1, 1]} : vector<8x122xf32> to vector<8x100xf32>
    %cst_39 = arith.constant dense<0.000000e+00> : vector<8x100xf32>
    %38 = tpu.matmul %15, %37, %cst_39 {dimension_numbers = #tpu.dot_dimension_numbers<[1], [0], [0], [1], [0, 0, 1, 1], [], []>} : vector<8x8xf32>, vector<8x100xf32>, vector<8x100xf32> -> vector<8x100xf32>
    %39 = arith.addf %36, %38 : vector<8x100xf32>
    %40 = vector.extract_strided_slice %1 {offsets = [0, 11], sizes = [8, 100], strides = [1, 1]} : vector<8x122xf32> to vector<8x100xf32>
    %cst_40 = arith.constant dense<0.000000e+00> : vector<8x100xf32>
    %41 = tpu.matmul %17, %40, %cst_40 {dimension_numbers = #tpu.dot_dimension_numbers<[1], [0], [0], [1], [0, 0, 1, 1], [], []>} : vector<8x8xf32>, vector<8x100xf32>, vector<8x100xf32> -> vector<8x100xf32>
    %42 = arith.addf %39, %41 : vector<8x100xf32>
    %43 = vector.extract_strided_slice %3 {offsets = [0, 11], sizes = [8, 100], strides = [1, 1]} : vector<8x122xf32> to vector<8x100xf32>
    %cst_41 = arith.constant dense<0.000000e+00> : vector<8x100xf32>
    %44 = tpu.matmul %19, %43, %cst_41 {dimension_numbers = #tpu.dot_dimension_numbers<[1], [0], [0], [1], [0, 0, 1, 1], [], []>} : vector<8x8xf32>, vector<8x100xf32>, vector<8x100xf32> -> vector<8x100xf32>
    %45 = arith.addf %42, %44 : vector<8x100xf32>
    %46 = vector.extract_strided_slice %7 {offsets = [0, 10], sizes = [8, 100], strides = [1, 1]} : vector<8x122xf32> to vector<8x100xf32>
    %cst_42 = arith.constant dense<0.000000e+00> : vector<8x100xf32>
    %47 = tpu.matmul %21, %46, %cst_42 {dimension_numbers = #tpu.dot_dimension_numbers<[1], [0], [0], [1], [0, 0, 1, 1], [], []>} : vector<8x8xf32>, vector<8x100xf32>, vector<8x100xf32> -> vector<8x100xf32>
    %48 = arith.addf %45, %47 : vector<8x100xf32>
    %49 = vector.extract_strided_slice %5 {offsets = [0, 11], sizes = [8, 100], strides = [1, 1]} : vector<8x122xf32> to vector<8x100xf32>
    %cst_43 = arith.constant dense<0.000000e+00> : vector<8x100xf32>
    %50 = tpu.matmul %23, %49, %cst_43 {dimension_numbers = #tpu.dot_dimension_numbers<[1], [0], [0], [1], [0, 0, 1, 1], [], []>} : vector<8x8xf32>, vector<8x100xf32>, vector<8x100xf32> -> vector<8x100xf32>
    %51 = arith.addf %48, %50 : vector<8x100xf32>
    %52 = vector.extract_strided_slice %7 {offsets = [0, 11], sizes = [8, 100], strides = [1, 1]} : vector<8x122xf32> to vector<8x100xf32>
    %cst_44 = arith.constant dense<0.000000e+00> : vector<8x100xf32>
    %53 = tpu.matmul %25, %52, %cst_44 {dimension_numbers = #tpu.dot_dimension_numbers<[1], [0], [0], [1], [0, 0, 1, 1], [], []>} : vector<8x8xf32>, vector<8x100xf32>, vector<8x100xf32> -> vector<8x100xf32>
    %54 = arith.addf %51, %53 : vector<8x100xf32>
    %cst_45 = arith.constant 0.000000e+00 : f32
    %55 = vector.broadcast %cst_45 : f32 to vector<8x100xf32>
    %56 = vector.extract_strided_slice %5 {offsets = [0, 1], sizes = [8, 100], strides = [1, 1]} : vector<8x122xf32> to vector<8x100xf32>
    %cst_46 = arith.constant dense<0.000000e+00> : vector<8x100xf32>
    %57 = tpu.matmul %9, %56, %cst_46 {dimension_numbers = #tpu.dot_dimension_numbers<[1], [0], [0], [1], [0, 0, 1, 1], [], []>} : vector<8x8xf32>, vector<8x100xf32>, vector<8x100xf32> -> vector<8x100xf32>
    %58 = arith.addf %55, %57 : vector<8x100xf32>
    %59 = vector.extract_strided_slice %7 {offsets = [0, 1], sizes = [8, 100], strides = [1, 1]} : vector<8x122xf32> to vector<8x100xf32>
    %cst_47 = arith.constant dense<0.000000e+00> : vector<8x100xf32>
    %60 = tpu.matmul %11, %59, %cst_47 {dimension_numbers = #tpu.dot_dimension_numbers<[1], [0], [0], [1], [0, 0, 1, 1], [], []>} : vector<8x8xf32>, vector<8x100xf32>, vector<8x100xf32> -> vector<8x100xf32>
    %61 = arith.addf %58, %60 : vector<8x100xf32>
    %62 = vector.extract_strided_slice %5 {offsets = [0, 2], sizes = [8, 100], strides = [1, 1]} : vector<8x122xf32> to vector<8x100xf32>
    %cst_48 = arith.constant dense<0.000000e+00> : vector<8x100xf32>
    %63 = tpu.matmul %13, %62, %cst_48 {dimension_numbers = #tpu.dot_dimension_numbers<[1], [0], [0], [1], [0, 0, 1, 1], [], []>} : vector<8x8xf32>, vector<8x100xf32>, vector<8x100xf32> -> vector<8x100xf32>
    %64 = arith.addf %61, %63 : vector<8x100xf32>
    %65 = vector.extract_strided_slice %1 {offsets = [0, 11], sizes = [8, 100], strides = [1, 1]} : vector<8x122xf32> to vector<8x100xf32>
    %cst_49 = arith.constant dense<0.000000e+00> : vector<8x100xf32>
    %66 = tpu.matmul %15, %65, %cst_49 {dimension_numbers = #tpu.dot_dimension_numbers<[1], [0], [0], [1], [0, 0, 1, 1], [], []>} : vector<8x8xf32>, vector<8x100xf32>, vector<8x100xf32> -> vector<8x100xf32>
    %67 = arith.addf %64, %66 : vector<8x100xf32>
    %68 = vector.extract_strided_slice %3 {offsets = [0, 11], sizes = [8, 100], strides = [1, 1]} : vector<8x122xf32> to vector<8x100xf32>
    %cst_50 = arith.constant dense<0.000000e+00> : vector<8x100xf32>
    %69 = tpu.matmul %17, %68, %cst_50 {dimension_numbers = #tpu.dot_dimension_numbers<[1], [0], [0], [1], [0, 0, 1, 1], [], []>} : vector<8x8xf32>, vector<8x100xf32>, vector<8x100xf32> -> vector<8x100xf32>
    %70 = arith.addf %67, %69 : vector<8x100xf32>
    %71 = vector.extract_strided_slice %1 {offsets = [0, 12], sizes = [8, 100], strides = [1, 1]} : vector<8x122xf32> to vector<8x100xf32>
    %cst_51 = arith.constant dense<0.000000e+00> : vector<8x100xf32>
    %72 = tpu.matmul %19, %71, %cst_51 {dimension_numbers = #tpu.dot_dimension_numbers<[1], [0], [0], [1], [0, 0, 1, 1], [], []>} : vector<8x8xf32>, vector<8x100xf32>, vector<8x100xf32> -> vector<8x100xf32>
    %73 = arith.addf %70, %72 : vector<8x100xf32>
    %74 = vector.extract_strided_slice %5 {offsets = [0, 11], sizes = [8, 100], strides = [1, 1]} : vector<8x122xf32> to vector<8x100xf32>
    %cst_52 = arith.constant dense<0.000000e+00> : vector<8x100xf32>
    %75 = tpu.matmul %21, %74, %cst_52 {dimension_numbers = #tpu.dot_dimension_numbers<[1], [0], [0], [1], [0, 0, 1, 1], [], []>} : vector<8x8xf32>, vector<8x100xf32>, vector<8x100xf32> -> vector<8x100xf32>
    %76 = arith.addf %73, %75 : vector<8x100xf32>
    %77 = vector.extract_strided_slice %7 {offsets = [0, 11], sizes = [8, 100], strides = [1, 1]} : vector<8x122xf32> to vector<8x100xf32>
    %cst_53 = arith.constant dense<0.000000e+00> : vector<8x100xf32>
    %78 = tpu.matmul %23, %77, %cst_53 {dimension_numbers = #tpu.dot_dimension_numbers<[1], [0], [0], [1], [0, 0, 1, 1], [], []>} : vector<8x8xf32>, vector<8x100xf32>, vector<8x100xf32> -> vector<8x100xf32>
    %79 = arith.addf %76, %78 : vector<8x100xf32>
    %80 = vector.extract_strided_slice %5 {offsets = [0, 12], sizes = [8, 100], strides = [1, 1]} : vector<8x122xf32> to vector<8x100xf32>
    %cst_54 = arith.constant dense<0.000000e+00> : vector<8x100xf32>
    %81 = tpu.matmul %25, %80, %cst_54 {dimension_numbers = #tpu.dot_dimension_numbers<[1], [0], [0], [1], [0, 0, 1, 1], [], []>} : vector<8x8xf32>, vector<8x100xf32>, vector<8x100xf32> -> vector<8x100xf32>
    %82 = arith.addf %79, %81 : vector<8x100xf32>
    %83 = arith.maximumf %54, %82 : vector<8x100xf32>
    %cst_55 = arith.constant 0.000000e+00 : f32
    %84 = vector.broadcast %cst_55 : f32 to vector<8x100xf32>
    %85 = vector.extract_strided_slice %3 {offsets = [0, 10], sizes = [8, 100], strides = [1, 1]} : vector<8x122xf32> to vector<8x100xf32>
    %cst_56 = arith.constant dense<0.000000e+00> : vector<8x100xf32>
    %86 = tpu.matmul %9, %85, %cst_56 {dimension_numbers = #tpu.dot_dimension_numbers<[1], [0], [0], [1], [0, 0, 1, 1], [], []>} : vector<8x8xf32>, vector<8x100xf32>, vector<8x100xf32> -> vector<8x100xf32>
    %87 = arith.addf %84, %86 : vector<8x100xf32>
    %88 = vector.extract_strided_slice %1 {offsets = [0, 11], sizes = [8, 100], strides = [1, 1]} : vector<8x122xf32> to vector<8x100xf32>
    %cst_57 = arith.constant dense<0.000000e+00> : vector<8x100xf32>
    %89 = tpu.matmul %11, %88, %cst_57 {dimension_numbers = #tpu.dot_dimension_numbers<[1], [0], [0], [1], [0, 0, 1, 1], [], []>} : vector<8x8xf32>, vector<8x100xf32>, vector<8x100xf32> -> vector<8x100xf32>
    %90 = arith.addf %87, %89 : vector<8x100xf32>
    %91 = vector.extract_strided_slice %3 {offsets = [0, 11], sizes = [8, 100], strides = [1, 1]} : vector<8x122xf32> to vector<8x100xf32>
    %cst_58 = arith.constant dense<0.000000e+00> : vector<8x100xf32>
    %92 = tpu.matmul %13, %91, %cst_58 {dimension_numbers = #tpu.dot_dimension_numbers<[1], [0], [0], [1], [0, 0, 1, 1], [], []>} : vector<8x8xf32>, vector<8x100xf32>, vector<8x100xf32> -> vector<8x100xf32>
    %93 = arith.addf %90, %92 : vector<8x100xf32>
    %94 = vector.extract_strided_slice %7 {offsets = [0, 10], sizes = [8, 100], strides = [1, 1]} : vector<8x122xf32> to vector<8x100xf32>
    %cst_59 = arith.constant dense<0.000000e+00> : vector<8x100xf32>
    %95 = tpu.matmul %15, %94, %cst_59 {dimension_numbers = #tpu.dot_dimension_numbers<[1], [0], [0], [1], [0, 0, 1, 1], [], []>} : vector<8x8xf32>, vector<8x100xf32>, vector<8x100xf32> -> vector<8x100xf32>
    %96 = arith.addf %93, %95 : vector<8x100xf32>
    %97 = vector.extract_strided_slice %5 {offsets = [0, 11], sizes = [8, 100], strides = [1, 1]} : vector<8x122xf32> to vector<8x100xf32>
    %cst_60 = arith.constant dense<0.000000e+00> : vector<8x100xf32>
    %98 = tpu.matmul %17, %97, %cst_60 {dimension_numbers = #tpu.dot_dimension_numbers<[1], [0], [0], [1], [0, 0, 1, 1], [], []>} : vector<8x8xf32>, vector<8x100xf32>, vector<8x100xf32> -> vector<8x100xf32>
    %99 = arith.addf %96, %98 : vector<8x100xf32>
    %100 = vector.extract_strided_slice %7 {offsets = [0, 11], sizes = [8, 100], strides = [1, 1]} : vector<8x122xf32> to vector<8x100xf32>
    %cst_61 = arith.constant dense<0.000000e+00> : vector<8x100xf32>
    %101 = tpu.matmul %19, %100, %cst_61 {dimension_numbers = #tpu.dot_dimension_numbers<[1], [0], [0], [1], [0, 0, 1, 1], [], []>} : vector<8x8xf32>, vector<8x100xf32>, vector<8x100xf32> -> vector<8x100xf32>
    %102 = arith.addf %99, %101 : vector<8x100xf32>
    %103 = vector.extract_strided_slice %3 {offsets = [0, 20], sizes = [8, 100], strides = [1, 1]} : vector<8x122xf32> to vector<8x100xf32>
    %cst_62 = arith.constant dense<0.000000e+00> : vector<8x100xf32>
    %104 = tpu.matmul %21, %103, %cst_62 {dimension_numbers = #tpu.dot_dimension_numbers<[1], [0], [0], [1], [0, 0, 1, 1], [], []>} : vector<8x8xf32>, vector<8x100xf32>, vector<8x100xf32> -> vector<8x100xf32>
    %105 = arith.addf %102, %104 : vector<8x100xf32>
    %106 = vector.extract_strided_slice %1 {offsets = [0, 21], sizes = [8, 100], strides = [1, 1]} : vector<8x122xf32> to vector<8x100xf32>
    %cst_63 = arith.constant dense<0.000000e+00> : vector<8x100xf32>
    %107 = tpu.matmul %23, %106, %cst_63 {dimension_numbers = #tpu.dot_dimension_numbers<[1], [0], [0], [1], [0, 0, 1, 1], [], []>} : vector<8x8xf32>, vector<8x100xf32>, vector<8x100xf32> -> vector<8x100xf32>
    %108 = arith.addf %105, %107 : vector<8x100xf32>
    %109 = vector.extract_strided_slice %3 {offsets = [0, 21], sizes = [8, 100], strides = [1, 1]} : vector<8x122xf32> to vector<8x100xf32>
    %cst_64 = arith.constant dense<0.000000e+00> : vector<8x100xf32>
    %110 = tpu.matmul %25, %109, %cst_64 {dimension_numbers = #tpu.dot_dimension_numbers<[1], [0], [0], [1], [0, 0, 1, 1], [], []>} : vector<8x8xf32>, vector<8x100xf32>, vector<8x100xf32> -> vector<8x100xf32>
    %111 = arith.addf %108, %110 : vector<8x100xf32>
    %112 = arith.maximumf %83, %111 : vector<8x100xf32>
    %cst_65 = arith.constant 0.000000e+00 : f32
    %113 = vector.broadcast %cst_65 : f32 to vector<8x100xf32>
    %114 = vector.extract_strided_slice %1 {offsets = [0, 11], sizes = [8, 100], strides = [1, 1]} : vector<8x122xf32> to vector<8x100xf32>
    %cst_66 = arith.constant dense<0.000000e+00> : vector<8x100xf32>
    %115 = tpu.matmul %9, %114, %cst_66 {dimension_numbers = #tpu.dot_dimension_numbers<[1], [0], [0], [1], [0, 0, 1, 1], [], []>} : vector<8x8xf32>, vector<8x100xf32>, vector<8x100xf32> -> vector<8x100xf32>
    %116 = arith.addf %113, %115 : vector<8x100xf32>
    %117 = vector.extract_strided_slice %3 {offsets = [0, 11], sizes = [8, 100], strides = [1, 1]} : vector<8x122xf32> to vector<8x100xf32>
    %cst_67 = arith.constant dense<0.000000e+00> : vector<8x100xf32>
    %118 = tpu.matmul %11, %117, %cst_67 {dimension_numbers = #tpu.dot_dimension_numbers<[1], [0], [0], [1], [0, 0, 1, 1], [], []>} : vector<8x8xf32>, vector<8x100xf32>, vector<8x100xf32> -> vector<8x100xf32>
    %119 = arith.addf %116, %118 : vector<8x100xf32>
    %120 = vector.extract_strided_slice %1 {offsets = [0, 12], sizes = [8, 100], strides = [1, 1]} : vector<8x122xf32> to vector<8x100xf32>
    %cst_68 = arith.constant dense<0.000000e+00> : vector<8x100xf32>
    %121 = tpu.matmul %13, %120, %cst_68 {dimension_numbers = #tpu.dot_dimension_numbers<[1], [0], [0], [1], [0, 0, 1, 1], [], []>} : vector<8x8xf32>, vector<8x100xf32>, vector<8x100xf32> -> vector<8x100xf32>
    %122 = arith.addf %119, %121 : vector<8x100xf32>
    %123 = vector.extract_strided_slice %5 {offsets = [0, 11], sizes = [8, 100], strides = [1, 1]} : vector<8x122xf32> to vector<8x100xf32>
    %cst_69 = arith.constant dense<0.000000e+00> : vector<8x100xf32>
    %124 = tpu.matmul %15, %123, %cst_69 {dimension_numbers = #tpu.dot_dimension_numbers<[1], [0], [0], [1], [0, 0, 1, 1], [], []>} : vector<8x8xf32>, vector<8x100xf32>, vector<8x100xf32> -> vector<8x100xf32>
    %125 = arith.addf %122, %124 : vector<8x100xf32>
    %126 = vector.extract_strided_slice %7 {offsets = [0, 11], sizes = [8, 100], strides = [1, 1]} : vector<8x122xf32> to vector<8x100xf32>
    %cst_70 = arith.constant dense<0.000000e+00> : vector<8x100xf32>
    %127 = tpu.matmul %17, %126, %cst_70 {dimension_numbers = #tpu.dot_dimension_numbers<[1], [0], [0], [1], [0, 0, 1, 1], [], []>} : vector<8x8xf32>, vector<8x100xf32>, vector<8x100xf32> -> vector<8x100xf32>
    %128 = arith.addf %125, %127 : vector<8x100xf32>
    %129 = vector.extract_strided_slice %5 {offsets = [0, 12], sizes = [8, 100], strides = [1, 1]} : vector<8x122xf32> to vector<8x100xf32>
    %cst_71 = arith.constant dense<0.000000e+00> : vector<8x100xf32>
    %130 = tpu.matmul %19, %129, %cst_71 {dimension_numbers = #tpu.dot_dimension_numbers<[1], [0], [0], [1], [0, 0, 1, 1], [], []>} : vector<8x8xf32>, vector<8x100xf32>, vector<8x100xf32> -> vector<8x100xf32>
    %131 = arith.addf %128, %130 : vector<8x100xf32>
    %132 = vector.extract_strided_slice %1 {offsets = [0, 21], sizes = [8, 100], strides = [1, 1]} : vector<8x122xf32> to vector<8x100xf32>
    %cst_72 = arith.constant dense<0.000000e+00> : vector<8x100xf32>
    %133 = tpu.matmul %21, %132, %cst_72 {dimension_numbers = #tpu.dot_dimension_numbers<[1], [0], [0], [1], [0, 0, 1, 1], [], []>} : vector<8x8xf32>, vector<8x100xf32>, vector<8x100xf32> -> vector<8x100xf32>
    %134 = arith.addf %131, %133 : vector<8x100xf32>
    %135 = vector.extract_strided_slice %3 {offsets = [0, 21], sizes = [8, 100], strides = [1, 1]} : vector<8x122xf32> to vector<8x100xf32>
    %cst_73 = arith.constant dense<0.000000e+00> : vector<8x100xf32>
    %136 = tpu.matmul %23, %135, %cst_73 {dimension_numbers = #tpu.dot_dimension_numbers<[1], [0], [0], [1], [0, 0, 1, 1], [], []>} : vector<8x8xf32>, vector<8x100xf32>, vector<8x100xf32> -> vector<8x100xf32>
    %137 = arith.addf %134, %136 : vector<8x100xf32>
    %138 = vector.extract_strided_slice %1 {offsets = [0, 22], sizes = [8, 100], strides = [1, 1]} : vector<8x122xf32> to vector<8x100xf32>
    %cst_74 = arith.constant dense<0.000000e+00> : vector<8x100xf32>
    %139 = tpu.matmul %25, %138, %cst_74 {dimension_numbers = #tpu.dot_dimension_numbers<[1], [0], [0], [1], [0, 0, 1, 1], [], []>} : vector<8x8xf32>, vector<8x100xf32>, vector<8x100xf32> -> vector<8x100xf32>
    %140 = arith.addf %137, %139 : vector<8x100xf32>
    %141 = arith.maximumf %112, %140 : vector<8x100xf32>
    %142 = vector.broadcast %26 : vector<8x1xf32> to vector<8x100xf32>
    %143 = arith.addf %141, %142 : vector<8x100xf32>
    %cst_75 = arith.constant 0.000000e+00 : f32
    %144 = vector.broadcast %cst_75 : f32 to vector<8x100xf32>
    %145 = arith.maximumf %143, %144 : vector<8x100xf32>
    %c0_76 = arith.constant 0 : index
    %c0_77 = arith.constant 0 : index
    %c0_78 = arith.constant 0 : index
    %146 = vector.load %arg4[%c0_76, %c0_77, %c0_78] : memref<1x8x100xf32, #tpu.memory_space<vmem>>, vector<1x8x100xf32>
    %147 = vector.shape_cast %146 : vector<1x8x100xf32> to vector<8x100xf32>
    %148 = vector.shape_cast %145 : vector<8x100xf32> to vector<1x8x100xf32>
    tpu.vector_store %arg4[%c0_76, %c0_77, %c0_78], %148 {strides = array<i32>} : memref<1x8x100xf32, #tpu.memory_space<vmem>>, vector<1x8x100xf32>,
    return
  }
  func.func @transform_0(%arg0: i32) -> (i32, i32, i32, i32) {
    %c0_i32 = arith.constant 0 : i32
    %c0_i32_0 = arith.constant 0 : i32
    %c0_i32_1 = arith.constant 0 : i32
    %c0_i32_2 = arith.constant 0 : i32
    return %arg0, %c0_i32, %c0_i32_0, %c0_i32_1 : i32, i32, i32, i32
  }
  func.func @transform_1(%arg0: i32) -> (i32, i32, i32) {
    %c0_i32 = arith.constant 0 : i32
    %c0_i32_0 = arith.constant 0 : i32
    %c0_i32_1 = arith.constant 0 : i32
    %c0_i32_2 = arith.constant 0 : i32
    return %c0_i32, %c0_i32_0, %c0_i32_1 : i32, i32, i32
  }
  func.func @transform_2(%arg0: i32) -> (i32, i32) {
    %c0_i32 = arith.constant 0 : i32
    %c0_i32_0 = arith.constant 0 : i32
    %c0_i32_1 = arith.constant 0 : i32
    return %c0_i32, %c0_i32_0 : i32, i32
  }
  func.func @transform_3(%arg0: i32) -> (i32, i32, i32) {
    %c0_i32 = arith.constant 0 : i32
    %c0_i32_0 = arith.constant 0 : i32
    %c0_i32_1 = arith.constant 0 : i32
    return %arg0, %c0_i32, %c0_i32_0 : i32, i32, i32
  }
}

module attributes {stable_mosaic.version = 11 : i64} {
  func.func @_mlp_kernel(%arg0: i32, %arg1: memref<2x512xf32, #tpu.memory_space<vmem>>, %arg2: memref<512x32xf32, #tpu.memory_space<vmem>>, %arg3: memref<1x32xf32, #tpu.memory_space<vmem>>, %arg4: memref<32x10xf32, #tpu.memory_space<vmem>>, %arg5: memref<1x10xf32, #tpu.memory_space<vmem>>, %arg6: memref<2x10xf32, #tpu.memory_space<vmem>>) attributes {dimension_semantics = [#tpu.dimension_semantics<arbitrary>], iteration_bounds = array<i64: 1>, scalar_prefetch = 0 : i64, scratch_operands = 0 : i64, tpu.core_type = #tpu.core_type<tc>, window_params = [{pipeline_mode = #tpu.pipeline_mode<synchronous>, transform_indices = @transform_0, window_bounds = array<i64: 2, 512>}, {pipeline_mode = #tpu.pipeline_mode<synchronous>, transform_indices = @transform_1, window_bounds = array<i64: 512, 32>}, {pipeline_mode = #tpu.pipeline_mode<synchronous>, transform_indices = @transform_2, window_bounds = array<i64: 1, 32>}, {pipeline_mode = #tpu.pipeline_mode<synchronous>, transform_indices = @transform_3, window_bounds = array<i64: 32, 10>}, {pipeline_mode = #tpu.pipeline_mode<synchronous>, transform_indices = @transform_4, window_bounds = array<i64: 1, 10>}, {pipeline_mode = #tpu.pipeline_mode<synchronous>, transform_indices = @transform_5, window_bounds = array<i64: 2, 10>}]} {
    %c0 = arith.constant 0 : index
    %c0_0 = arith.constant 0 : index
    %0 = vector.load %arg1[%c0, %c0_0] : memref<2x512xf32, #tpu.memory_space<vmem>>, vector<2x512xf32>
    %c0_1 = arith.constant 0 : index
    %c0_2 = arith.constant 0 : index
    %1 = vector.load %arg2[%c0_1, %c0_2] : memref<512x32xf32, #tpu.memory_space<vmem>>, vector<512x32xf32>
    %cst = arith.constant dense<0.000000e+00> : vector<2x32xf32>
    %2 = tpu.matmul %0, %1, %cst {dimension_numbers = #tpu.dot_dimension_numbers<[1], [0], [0], [1], [0, 0, 1, 1], [], []>} : vector<2x512xf32>, vector<512x32xf32>, vector<2x32xf32> -> vector<2x32xf32>
    %c0_3 = arith.constant 0 : index
    %c0_4 = arith.constant 0 : index
    %3 = vector.load %arg3[%c0_3, %c0_4] : memref<1x32xf32, #tpu.memory_space<vmem>>, vector<1x32xf32>
    %4 = vector.broadcast %3 : vector<1x32xf32> to vector<2x32xf32>
    %5 = arith.addf %2, %4 : vector<2x32xf32>
    %cst_5 = arith.constant 0.000000e+00 : f32
    %6 = vector.broadcast %cst_5 : f32 to vector<2x32xf32>
    %7 = arith.maximumf %5, %6 : vector<2x32xf32>
    %c0_6 = arith.constant 0 : index
    %c0_7 = arith.constant 0 : index
    %8 = vector.load %arg4[%c0_6, %c0_7] : memref<32x10xf32, #tpu.memory_space<vmem>>, vector<32x10xf32>
    %cst_8 = arith.constant dense<0.000000e+00> : vector<2x10xf32>
    %9 = tpu.matmul %7, %8, %cst_8 {dimension_numbers = #tpu.dot_dimension_numbers<[1], [0], [0], [1], [0, 0, 1, 1], [], []>} : vector<2x32xf32>, vector<32x10xf32>, vector<2x10xf32> -> vector<2x10xf32>
    %c0_9 = arith.constant 0 : index
    %c0_10 = arith.constant 0 : index
    %10 = vector.load %arg5[%c0_9, %c0_10] : memref<1x10xf32, #tpu.memory_space<vmem>>, vector<1x10xf32>
    %11 = vector.broadcast %10 : vector<1x10xf32> to vector<2x10xf32>
    %12 = arith.addf %9, %11 : vector<2x10xf32>
    %c0_11 = arith.constant 0 : index
    %c0_12 = arith.constant 0 : index
    %13 = vector.load %arg6[%c0_11, %c0_12] : memref<2x10xf32, #tpu.memory_space<vmem>>, vector<2x10xf32>
    tpu.vector_store %arg6[%c0_11, %c0_12], %12 {strides = array<i32>} : memref<2x10xf32, #tpu.memory_space<vmem>>, vector<2x10xf32>,
    return
  }
  func.func @transform_0(%arg0: i32) -> (i32, i32) {
    %c0_i32 = arith.constant 0 : i32
    %c0_i32_0 = arith.constant 0 : i32
    %c0_i32_1 = arith.constant 0 : i32
    return %c0_i32, %c0_i32_0 : i32, i32
  }
  func.func @transform_1(%arg0: i32) -> (i32, i32) {
    %c0_i32 = arith.constant 0 : i32
    %c0_i32_0 = arith.constant 0 : i32
    %c0_i32_1 = arith.constant 0 : i32
    return %c0_i32, %c0_i32_0 : i32, i32
  }
  func.func @transform_2(%arg0: i32) -> (i32, i32) {
    %c0_i32 = arith.constant 0 : i32
    %c0_i32_0 = arith.constant 0 : i32
    %c0_i32_1 = arith.constant 0 : i32
    return %c0_i32, %c0_i32_0 : i32, i32
  }
  func.func @transform_3(%arg0: i32) -> (i32, i32) {
    %c0_i32 = arith.constant 0 : i32
    %c0_i32_0 = arith.constant 0 : i32
    %c0_i32_1 = arith.constant 0 : i32
    return %c0_i32, %c0_i32_0 : i32, i32
  }
  func.func @transform_4(%arg0: i32) -> (i32, i32) {
    %c0_i32 = arith.constant 0 : i32
    %c0_i32_0 = arith.constant 0 : i32
    %c0_i32_1 = arith.constant 0 : i32
    return %c0_i32, %c0_i32_0 : i32, i32
  }
  func.func @transform_5(%arg0: i32) -> (i32, i32) {
    %c0_i32 = arith.constant 0 : i32
    %c0_i32_0 = arith.constant 0 : i32
    %c0_i32_1 = arith.constant 0 : i32
    return %c0_i32, %c0_i32_0 : i32, i32
  }
}

</mosaic_0001>

<bundles_post_ra>
// kernel: mycnn_forward.3
= control target key start
LH: loop header
LB: loop body
LE: loop exit
PB: predicated region body
PF: predicated region fallthrough
CT: control target
= control target key end

     0   :  { %s6353_s12 = smov 0   ;;  %s7064_s0 = inlined_call_operand.vmem [shape: f32[2,4,3,362], index: 0, kind: input, shape index: {}]   ;;  %s7065_s1 = inlined_call_operand.vmem [shape: f32[9,8,3], index: 1, kind: input, shape index: {}]   ;;  %s7066_s2 = inlined_call_operand.vmem [shape: f32[8,1], index: 2, kind: input, shape index: {}]   ;;  %s7067_s3 = inlined_call_operand.vmem [shape: f32[2,8,324], index: 3, kind: output, shape index: {}]  }
   0x1 LB: > { %s5704_s13 = sadd.s32 4294967295, %s6320_s12   ;;  %p5708_p0 = scmp.ge.s32.totalorder %s6320_s12, 1  ;;  %s6320_s12 = sphi %s6353_s12, %s13_s12  }
   0x2   : > { %p137_p1 = scmp.lt.s32.totalorder %s6320_s12, 3 }
   0x4   : > { %p138_p2 = pnand %p5708_p0, %p137_p1 }
   0x5   : > { %p161_p3 = scmp.lt.s32.totalorder (!%p138_p2), %s5704_s13, 1  ;;  %v6322_v0 = vmov (!%p138_p2), 0.0   ;;  %vm6323_vm0 = vmmov (!%p138_p2), 0   ;;  %s6324_s18 = smov (!%p138_p2), 127   ;;  %vm216_vm1 = vcmask (!%p138_p2), 1042432   ;;  %vm209_vm2 = vcmask (!%p138_p2), 1039360  }
   0x6   : > { %141 = sbr.rel (%p138_p2) target bundleno = 630 (0x276), region = 32  ;;  %5979 = vmatprep.subr.mxu1 (!%p138_p2), %v6322_v0  ;;  %5981 = vmatprep.mubr.msk.f32.mxu1 (!%p138_p2), %vm6323_vm0, %v6322_v0  ;;  %s6325_s19 = smov (!%p138_p2), 110   ;;  %v6408_v16 = vld [vmem:[%s7065_s1 + $0x8] sm:$0xff] (!%p138_p2)  ;;  %vm212_vm3 = vcmask (!%p138_p2), 23552   ;;  %v6449_v23 = vld [vmem:[%s7065_s1] sm:$0xff] (!%p138_p2)  ;;  %vm687_vm4 = vcmask (!%p138_p2), 900096  }
   0x7   : > { %287 = vmatprep.mubr.f32.mxu0 (!%p138_p2), %v6322_v0  ;;  %s6326_s20 = smov (!%p138_p2), 109   ;;  %s6327_s21 = smov (!%p138_p2), 126   ;;  %v6480_v30 = vld [vmem:[%s7065_s1 + $0x10] sm:$0xff] (!%p138_p2)  ;;  %vm852_vm5 = vcmask (!%p138_p2), 891904   ;;  %v6510_v36 = vld [vmem:[%s7065_s1 + $0x18] sm:$0xff] (!%p138_p2)  ;;  %v6540_v43 = vld [vmem:[%s7065_s1 + $0x20] sm:$0xff] (!%p138_p2) }
   0x8   : > { %s6328_s22 = smov (!%p138_p2), 108   ;;  %s6329_s23 = smov (!%p138_p2), 92   ;;  %v6566_v48 = vld [vmem:[%s7065_s1 + $0x28] sm:$0xff] (!%p138_p2)  ;;  %v6594_v53 = vld [vmem:[%s7065_s1 + $0x30] sm:$0xff] (!%p138_p2)  ;;  %v6622_v59 = vld [vmem:[%s7065_s1 + $0x38] sm:$0xff] (!%p138_p2)  ;;  %vm1940_vm6 = vcmask (!%p138_p2), 1031168  }
   0x9   : > { %s6330_s24 = smov (!%p138_p2), 91   ;;  %s6331_s29 = smov (!%p138_p2), 90   ;;  %v6644_v61 = vld [vmem:[%s7065_s1 + $0x40] sm:$0xff] (!%p138_p2)  ;;  %vm2387_vm7 = vcmask (!%p138_p2), 883712   ;;  %vm3853_vm8 = vcmask (!%p138_p2), 752640   ;;  %vm4012_vm9 = vcmask (!%p138_p2), 744448  }
   0xa   : > { %vm5478_vm10 = vcmask (!%p138_p2), 736256   ;;  %vm5647_vm11 = vcmask (!%p138_p2), 556032  }
   0xd   : > { %s7069_s13 = smov (!%p161_p3, %s5704_s13), 1 }
   0xe   : > { %s6287_s14 = smul.u32 48, %s7069_s13 }
  0x10   : > { %s165_s17 = scalar_lea.vmem %s7064_s0, %s6287_s14 }
  0x11   : > { %v5713_v1 = vld [vmem:[%s165_s17 + $0x18] sm:$0x77]  ;;  %v6371_v2 = vld [vmem:[%s165_s17 + $0x24] sm:$0x77]  ;;  %v5714_v5 = vld [vmem:[%s165_s17 + $0x20] sm:$0x7] }
  0x12   : > { %203 = vrot.lane.b32.xlu1 %v5713_v1, %s6324_s18  ;;  %v202_v3 = vcombine.high %v5713_v1, %v5713_v1  ;;  %v6375_v4 = vcombine.high %v6371_v2, %v6371_v2  ;;  %v6378_v6 = vld [vmem:[%s165_s17 + $0x2c] sm:$0x7]  ;;  %v5712_v8 = vld [vmem:[%s165_s17 + $0x14] sm:$0x7]  ;;  %v6381_v9 = vld [vmem:[%s165_s17] sm:$0x77] }
  0x13   : > { %v5711_v7 = vld [vmem:[%s165_s17 + $0xc] sm:$0x77]  ;;  %v6386_v11 = vcombine.high %v6381_v9, %v6381_v9  ;;  %v6389_v12 = vld [vmem:[%s165_s17 + $0x8] sm:$0x7] }
  0x14   : > { %205 = vrot.lane.b32.xlu0 %v202_v3, %s6324_s18  ;;  %v680_v10 = vcombine.high %v5711_v7, %v5711_v7 }
  0x16   : > { %519 = vrot.lane.b32.xlu1 %v6375_v4, %s6324_s18 }
  0x18   : > { %207 = vrot.lane.b32.xlu0 %v5714_v5, %s6324_s18 }
  0x1a   : > { %517 = vrot.lane.b32.xlu1 %v6371_v2, %s6324_s18 }
  0x1c   : > { %521 = vrot.lane.b32.xlu0 %v6378_v6, %s6324_s18 }
  0x1e   : > { %685 = vrot.lane.b32.xlu1 %v5712_v8, %s6325_s19 }
  0x20   : > { %683 = vrot.lane.b32.xlu0 %v680_v10, %s6325_s19 }
  0x22   : > { %848 = vrot.lane.b32.xlu1 %v6386_v11, %s6326_s20 }
  0x24   : > { %681 = vrot.lane.b32.xlu0 %v5711_v7, %s6325_s19 }
  0x26   : > { %846 = vrot.lane.b32.xlu1 %v6381_v9, %s6326_s20 }
  0x28   : > { %850 = vrot.lane.b32.xlu0 %v6389_v12, %s6326_s20 }
  0x2a   : > { %1012 = vrot.lane.b32.xlu1 %v5712_v8, %s6326_s20 }
  0x2c   : > { %1010 = vrot.lane.b32.xlu0 %v680_v10, %s6326_s20 }
  0x2e   : > { %1171 = vrot.lane.b32.xlu1 %v6375_v4, %s6325_s19 }
  0x30   : > { %1008 = vrot.lane.b32.xlu0 %v5711_v7, %s6326_s20 }
  0x32   : > { %1169 = vrot.lane.b32.xlu1 %v6371_v2, %s6325_s19 }
  0x34   : > { %1173 = vrot.lane.b32.xlu0 %v6378_v6, %s6325_s19 }
  0x36   : > { %1334 = vrot.lane.b32.xlu1 %v5714_v5, %s6326_s20 }
  0x38   : > { %1332 = vrot.lane.b32.xlu0 %v202_v3, %s6326_s20 }
  0x3a   : > { %1493 = vrot.lane.b32.xlu1 %v6375_v4, %s6326_s20 }
  0x3c   : > { %1330 = vrot.lane.b32.xlu0 %v5713_v1, %s6326_s20 }
  0x3e   : > { %1491 = vrot.lane.b32.xlu1 %v6371_v2, %s6326_s20 }
  0x40   : > { %1495 = vrot.lane.b32.xlu0 %v6378_v6, %s6326_s20 }
  0x42   : > { %1938 = vrot.lane.b32.xlu1 %v5714_v5, %s6327_s21 }
  0x44   : > { %1936 = vrot.lane.b32.xlu0 %v202_v3, %s6327_s21 }
  0x46   : > { %2383 = vrot.lane.b32.xlu1 %v6386_v11, %s6328_s22 }
  0x48   : > { %1934 = vrot.lane.b32.xlu0 %v5713_v1, %s6327_s21  ;;  %s6288_s21 = smul.u32 24, %s7069_s13 }
  0x4a   : > { %2381 = vrot.lane.b32.xlu1 %v6381_v9, %s6328_s22 }
  0x4c   : > { %2385 = vrot.lane.b32.xlu0 %v6389_v12, %s6328_s22 }
  0x4e   : > { %2832 = vrot.lane.b32.xlu1 %v5714_v5, %s6328_s22 }
  0x50   : > { %2830 = vrot.lane.b32.xlu0 %v202_v3, %s6328_s22 }
  0x52   : > { %3849 = vrot.lane.b32.xlu1 %v680_v10, %s6329_s23 }
  0x54   : > { %2828 = vrot.lane.b32.xlu0 %v5713_v1, %s6328_s22 }
  0x56   : > { %3847 = vrot.lane.b32.xlu1 %v5711_v7, %s6329_s23 }
  0x58   : > { %3851 = vrot.lane.b32.xlu0 %v5712_v8, %s6329_s23 }
  0x5a   : > { %4010 = vrot.lane.b32.xlu1 %v6389_v12, %s6330_s24 }
  0x5c   : > { %4008 = vrot.lane.b32.xlu0 %v6386_v11, %s6330_s24 }
  0x5e   : > { %4167 = vrot.lane.b32.xlu1 %v680_v10, %s6330_s24 }
  0x60   : > { %4006 = vrot.lane.b32.xlu0 %v6381_v9, %s6330_s24 }
  0x62   : > { %4165 = vrot.lane.b32.xlu1 %v5711_v7, %s6330_s24 }
  0x64   : > { %4169 = vrot.lane.b32.xlu0 %v5712_v8, %s6330_s24  ;;  %s170_s24 = scalar_lea.vmem %s7067_s3, %s6288_s21 }
  0x66   : > { %5476 = vrot.lane.b32.xlu1 %v6389_v12, %s6331_s29 }
  0x68   : > { %5474 = vrot.lane.b32.xlu0 %v6386_v11, %s6331_s29 }
  0x6c   : > { %5472 = vrot.lane.b32.xlu0 %v6381_v9, %s6331_s29 }
  0x84   : > { %v204_v13 = vpop.permute.xlu1 %203 }
  0x86   : > { %v206_v14 = vpop.permute.xlu0 %205 }
  0x87   : > { %v6423_v19 = vsel %vm209_vm2, %v204_v13, %v206_v14 }
  0x88   : > { %v520_v15 = vpop.permute.xlu1 %519 }
  0x8a   : > { %v6410_v17 = vpop.permute.xlu0 %207 }
  0x8b   : > { %5980 = vmatpush3.msk.msra.mxu1 %vm216_vm1, %v6410_v17  ;;  %v6416_v18 = vsel %vm209_vm2, %v206_v14, %v6410_v17 }
  0x8c   : > { %5725 = vmatprep.subr.msk.mxu0 %vm216_vm1, %v6416_v18  ;;  %5982 = vmatmul.mubr.msk.f32.vlgmr.msra.gmra.mrb[0].mxu1 %vm212_vm3, %v6408_v16  ;;  %v518_v20 = vpop.permute.xlu1 %517 }
  0x8d   : > { %5726 = vmatpush1.msk.msra.mxu0 %vm216_vm1, %v6423_v19  ;;  %5984 = vmatprep.subr.mxu1 %v6322_v0  ;;  %v6456_v26 = vsel %vm209_vm2, %v518_v20, %v520_v15 }
  0x8e   : > { %5727 = vmatmul.mubr.msk.f32.vlgmr.msra.gmra.mrb[0].mxu0 %vm212_vm3, %v6408_v16  ;;  %5730 = vmatprep.subr.msk.mxu0 %vm216_vm1, %v6375_v4  ;;  %v6432_v21 = vpop.permute.xlu0 %521 }
  0x8f   : > { %5731 = vmatpush1.msk.msra.mxu0 %vm216_vm1, %v6371_v2  ;;  %5985 = vmatpush3.msk.msra.mxu1 %vm216_vm1, %v6378_v6  ;;  %v6440_v22 = vsel %vm209_vm2, %v520_v15, %v6432_v21 }
  0x90   : > { %5986 = vmatprep.mubr.msk.f32.mxu1 %vm6323_vm0, %v6322_v0  ;;  %5735 = vmatprep.subr.msk.mxu0 %vm216_vm1, %v6440_v22  ;;  %v6453_v25 = vpop.permute.xlu1 %685 }
  0x91   : > { %5989 = vmatprep.subr.mxu1 %v6322_v0  ;;  %440 = vmatprep.mubr.f32.mxu0 %v6322_v0 }
  0x92   : > { %v684_v24 = vpop.permute.xlu0 %683 }
  0x93   : > { %v6466_v27 = vsel %vm687_vm4, %v684_v24, %v6453_v25 }
  0x94   : > { %5987 = vmatmul.mubr.msk.f32.vlgmr.msra.gmra.mrb[0].mxu1 %vm212_vm3, %v6449_v23  ;;  %v849_v29 = vpop.permute.xlu1 %848 }
  0x95   : > { %5990 = vmatpush3.msk.msra.mxu1 %vm216_vm1, %v6432_v21  ;;  %5991 = vmatprep.mubr.msk.f32.mxu1 %vm6323_vm0, %v6322_v0 }
  0x96   : > { %5732 = vmatmul.mubr.msk.f32.vlgmr.msra.gmra.mrb[0].mxu0 %vm212_vm3, %v6449_v23  ;;  %v682_v28 = vpop.permute.xlu0 %681  ;;  %5994 = vmatprep.subr.mxu1 %v6322_v0 }
  0x97   : > { %5736 = vmatpush1.msk.msra.mxu0 %vm216_vm1, %v6456_v26  ;;  %598 = vmatprep.mubr.f32.mxu0 %v6322_v0  ;;  %v6486_v32 = vsel %vm687_vm4, %v682_v28, %v684_v24 }
  0x98   : > { %5740 = vmatprep.subr.msk.mxu0 %vm216_vm1, %v6466_v27  ;;  %v847_v34 = vpop.permute.xlu1 %846 }
  0x99   : > { %v6515_v38 = vsel %vm852_vm5, %v847_v34, %v849_v29 }
  0x9a   : > { %v6483_v31 = vpop.permute.xlu0 %850 }
  0x9b   : > { %v6497_v33 = vsel %vm852_vm5, %v849_v29, %v6483_v31 }
  0x9c   : > { %5992 = vmatmul.mubr.msk.f32.vlgmr.msra.gmra.mrb[0].mxu1 %vm212_vm3, %v6480_v30  ;;  %v6512_v37 = vpop.permute.xlu1 %1012 }
  0x9d   : > { %5995 = vmatpush3.msk.msra.mxu1 %vm216_vm1, %v6453_v25  ;;  %5996 = vmatprep.mubr.msk.f32.mxu1 %vm6323_vm0, %v6322_v0 }
  0x9e   : > { %5737 = vmatmul.mubr.msk.f32.vlgmr.msra.gmra.mrb[0].mxu0 %vm212_vm3, %v6480_v30  ;;  %5999 = vmatprep.subr.mxu1 %v6322_v0  ;;  %v1011_v35 = vpop.permute.xlu0 %1010 }
  0x9f   : > { %5741 = vmatpush1.msk.msra.mxu0 %vm216_vm1, %v6486_v32  ;;  %763 = vmatprep.mubr.f32.mxu0 %v6322_v0  ;;  %v6525_v40 = vsel %vm852_vm5, %v1011_v35, %v6512_v37 }
  0xa0   : > { %5745 = vmatprep.subr.msk.mxu0 %vm216_vm1, %v6497_v33  ;;  %v1172_v41 = vpop.permute.xlu1 %1171 }
  0xa2   : > { %v1009_v39 = vpop.permute.xlu0 %1008 }
  0xa3   : > { %v6543_v44 = vsel %vm852_vm5, %v1009_v39, %v1011_v35 }
  0xa4   : > { %5997 = vmatmul.mubr.msk.f32.vlgmr.msra.gmra.mrb[0].mxu1 %vm212_vm3, %v6510_v36  ;;  %v1170_v46 = vpop.permute.xlu1 %1169 }
  0xa5   : > { %6000 = vmatpush3.msk.msra.mxu1 %vm216_vm1, %v6483_v31  ;;  %6001 = vmatprep.mubr.msk.f32.mxu1 %vm6323_vm0, %v6322_v0  ;;  %v6569_v49 = vsel %vm687_vm4, %v1170_v46, %v1172_v41 }
  0xa6   : > { %5742 = vmatmul.mubr.msk.f32.vlgmr.msra.gmra.mrb[0].mxu0 %vm212_vm3, %v6510_v36  ;;  %6004 = vmatprep.subr.mxu1 %v6322_v0  ;;  %v6535_v42 = vpop.permute.xlu0 %1173 }
  0xa7   : > { %5746 = vmatpush1.msk.msra.mxu0 %vm216_vm1, %v6515_v38  ;;  %928 = vmatprep.mubr.f32.mxu0 %v6322_v0  ;;  %v6553_v45 = vsel %vm687_vm4, %v1172_v41, %v6535_v42 }
  0xa8   : > { %5750 = vmatprep.subr.msk.mxu0 %vm216_vm1, %v6525_v40  ;;  %v6573_v51 = vpop.permute.xlu1 %1334 }
  0xaa   : > { %v1333_v47 = vpop.permute.xlu0 %1332 }
  0xab   : > { %v6581_v52 = vsel %vm852_vm5, %v1333_v47, %v6573_v51 }
  0xac   : > { %6002 = vmatmul.mubr.msk.f32.vlgmr.msra.gmra.mrb[0].mxu1 %vm212_vm3, %v6540_v43  ;;  %v1494_v55 = vpop.permute.xlu1 %1493 }
  0xad   : > { %6005 = vmatpush3.msk.msra.mxu1 %vm216_vm1, %v6512_v37  ;;  %6006 = vmatprep.mubr.msk.f32.mxu1 %vm6323_vm0, %v6322_v0 }
  0xae   : > { %5747 = vmatmul.mubr.msk.f32.vlgmr.msra.gmra.mrb[0].mxu0 %vm212_vm3, %v6540_v43  ;;  %6009 = vmatprep.subr.mxu1 %v6322_v0  ;;  %v1331_v50 = vpop.permute.xlu0 %1330 }
  0xaf   : > { %5751 = vmatpush1.msk.msra.mxu0 %vm216_vm1, %v6543_v44  ;;  %1089 = vmatprep.mubr.f32.mxu0 %v6322_v0  ;;  %v6599_v56 = vsel %vm852_vm5, %v1331_v50, %v1333_v47 }
  0xb0   : > { %5755 = vmatprep.subr.msk.mxu0 %vm216_vm1, %v6553_v45  ;;  %v1492_v58 = vpop.permute.xlu1 %1491 }
  0xb1   : > { %v6625_v60 = vsel %vm852_vm5, %v1492_v58, %v1494_v55 }
  0xb2   : > { %v6596_v54 = vpop.permute.xlu0 %1495 }
  0xb3   : > { %v6609_v57 = vsel %vm852_vm5, %v1494_v55, %v6596_v54 }
  0xb4   : > { %6007 = vmatmul.mubr.msk.f32.vlgmr.msra.gmra.mrb[0].mxu1 %vm212_vm3, %v6566_v48  ;;  %v1939_v62 = vpop.permute.xlu1 %1938 }
  0xb5   : > { %6010 = vmatpush3.msk.msra.mxu1 %vm216_vm1, %v6535_v42  ;;  %6011 = vmatprep.mubr.msk.f32.mxu1 %vm6323_vm0, %v6322_v0 }
  0xb6   : > { %5752 = vmatmul.mubr.msk.f32.vlgmr.msra.gmra.mrb[0].mxu0 %vm212_vm3, %v6566_v48  ;;  %6014 = vmatprep.subr.mxu1 %v6322_v0  ;;  %v1937_v63 = vpop.permute.xlu0 %1936 }
  0xb7   : > { %5756 = vmatpush1.msk.msra.mxu0 %vm216_vm1, %v6569_v49  ;;  %1250 = vmatprep.mubr.f32.mxu0 %v6322_v0  ;;  %v1942_v1 = vsel %vm1940_vm6, %v1937_v63, %v1939_v62 }
  0xb8   : > { %5760 = vmatprep.subr.msk.mxu0 %vm216_vm1, %v6581_v52  ;;  %v2384_v5 = vpop.permute.xlu1 %2383 }
  0xba   : > { %v1935_v2 = vpop.permute.xlu0 %1934 }
  0xbb   : > { %v1941_v3 = vsel %vm1940_vm6, %v1935_v2, %v1937_v63 }
  0xbc   : > { %6012 = vmatmul.mubr.msk.f32.vlgmr.msra.gmra.mrb[0].mxu1 %vm212_vm3, %v6594_v53  ;;  %v2382_v7 = vpop.permute.xlu1 %2381 }
  0xbd   : > { %6015 = vmatpush3.msk.msra.mxu1 %vm216_vm1, %v6573_v51  ;;  %6016 = vmatprep.mubr.msk.f32.mxu1 %vm6323_vm0, %v6322_v0  ;;  %v6722_v8 = vsel %vm2387_vm7, %v2382_v7, %v2384_v5 }
  0xbe   : > { %5757 = vmatmul.mubr.msk.f32.vlgmr.msra.gmra.mrb[0].mxu0 %vm212_vm3, %v6594_v53  ;;  %6019 = vmatprep.subr.mxu1 %v6322_v0  ;;  %v6701_v4 = vpop.permute.xlu0 %2385 }
  0xbf   : > { %5761 = vmatpush1.msk.msra.mxu0 %vm216_vm1, %v6599_v56  ;;  %1411 = vmatprep.mubr.f32.mxu0 %v6322_v0  ;;  %v6711_v6 = vsel %vm2387_vm7, %v2384_v5, %v6701_v4 }
  0xc0   : > { %5765 = vmatprep.subr.msk.mxu0 %vm216_vm1, %v6609_v57  ;;  %v6752_v9 = vpop.permute.xlu1 %2832 }
  0xc2   : > { %v2831_v10 = vpop.permute.xlu0 %2830 }
  0xc3   : > { %v6762_v11 = vsel %vm2387_vm7, %v2831_v10, %v6752_v9 }
  0xc4   : > { %6017 = vmatmul.mubr.msk.f32.vlgmr.msra.gmra.mrb[0].mxu1 %vm212_vm3, %v6622_v59  ;;  %v3850_v14 = vpop.permute.xlu1 %3849 }
  0xc5   : > { %6020 = vmatpush3.msk.msra.mxu1 %vm216_vm1, %v6596_v54  ;;  %6021 = vmatprep.mubr.msk.f32.mxu1 %vm6323_vm0, %v6322_v0 }
  0xc6   : > { %5762 = vmatmul.mubr.msk.f32.vlgmr.msra.gmra.mrb[0].mxu0 %vm212_vm3, %v6622_v59  ;;  %6024 = vmatprep.subr.mxu1 %v6322_v0  ;;  %v2829_v12 = vpop.permute.xlu0 %2828 }
  0xc7   : > { %5766 = vmatpush1.msk.msra.mxu0 %vm216_vm1, %v6625_v60  ;;  %1572 = vmatprep.mubr.f32.mxu0 %v6322_v0  ;;  %v6773_v13 = vsel %vm2387_vm7, %v2829_v12, %v2831_v10 }
  0xc8   : > { %5770 = vmatprep.subr.msk.mxu0 %vm216_vm1, %v6440_v22 }
  0xca   : > { %v3852_v15 = vpop.permute.xlu0 %3851 }
  0xcc   : > { %6022 = vmatmul.mubr.msk.f32.vlgmr.msra.gmra.mrb[0].mxu1 %vm212_vm3, %v6644_v61 }
  0xcd   : > { %6025 = vmatpush3.msk.msra.mxu1 %vm216_vm1, %v6432_v21  ;;  %6026 = vmatprep.mubr.msk.f32.mxu1 %vm6323_vm0, %v6322_v0 }
  0xce   : > { %5767 = vmatmul.mubr.msk.f32.vlgmr.msra.gmra.mrb[0].mxu0 %vm212_vm3, %v6644_v61  ;;  %6029 = vmatprep.subr.mxu1 %v6322_v0 }
  0xcf   : > { %5771 = vmatpush1.msk.msra.mxu0 %vm216_vm1, %v6456_v26  ;;  %1716 = vmatprep.mubr.f32.mxu0 %v6322_v0 }
  0xd0   : > { %5775 = vmatprep.subr.msk.mxu0 %vm216_vm1, %v6416_v18  ;;  %6027 = vmatmul.mubr.msk.f32.vlgmr.msra.gmra.mrb[2].mxu1 %vm212_vm3, %v6408_v16  ;;  %v3848_v18 = vpop.permute.xlu1 %3847 }
  0xd1   : > { %6030 = vmatpush3.msk.msra.mxu1 %vm216_vm1, %v6410_v17  ;;  %6031 = vmatprep.mubr.msk.f32.mxu1 %vm6323_vm0, %v6322_v0  ;;  %v3855_v17 = vsel %vm3853_vm8, %v3850_v14, %v3852_v15  ;;  %v3854_v20 = vsel %vm3853_vm8, %v3848_v18, %v3850_v14 }
  0xd2   : > { %5772 = vmatmul.mubr.msk.f32.vlgmr.msra.gmra.mrb[2].mxu0 %vm212_vm3, %v6408_v16  ;;  %6034 = vmatprep.subr.mxu1 %v6322_v0 }
  0xd3   : > { %5776 = vmatpush1.msk.msra.mxu0 %vm216_vm1, %v6423_v19  ;;  %1857 = vmatprep.mubr.f32.mxu0 %v6322_v0  ;;  %v4009_v19 = vpop.permute.xlu0 %4008 }
  0xd4   : > { %5780 = vmatprep.subr.msk.mxu0 %vm216_vm1, %v1942_v1  ;;  %v6874_v22 = vpop.permute.xlu1 %4010 }
  0xd5   : > { %v6881_v24 = vsel %vm4012_vm9, %v4009_v19, %v6874_v22 }
  0xd7   : > { %v4007_v21 = vpop.permute.xlu0 %4006 }
  0xd8   : > { %6032 = vmatmul.mubr.msk.f32.vlgmr.msra.gmra.mrb[2].mxu1 %vm212_vm3, %v6449_v23  ;;  %v4168_v26 = vpop.permute.xlu1 %4167 }
  0xd9   : > { %6035 = vmatpush3.msk.msra.mxu1 %vm216_vm1, %v1939_v62  ;;  %6036 = vmatprep.mubr.msk.f32.mxu1 %vm6323_vm0, %v6322_v0 }
  0xda   : > { %5777 = vmatmul.mubr.msk.f32.vlgmr.msra.gmra.mrb[2].mxu0 %vm212_vm3, %v6449_v23  ;;  %6039 = vmatprep.subr.mxu1 %v6322_v0 }
  0xdb   : > { %5781 = vmatpush1.msk.msra.mxu0 %vm216_vm1, %v1941_v3  ;;  %2013 = vmatprep.mubr.f32.mxu0 %v6322_v0 }
  0xdc   : > { %5785 = vmatprep.subr.msk.mxu0 %vm216_vm1, %v6497_v33  ;;  %v4166_v29 = vpop.permute.xlu1 %4165 }
  0xe0   : > { %6037 = vmatmul.mubr.msk.f32.vlgmr.msra.gmra.mrb[2].mxu1 %vm212_vm3, %v6480_v30 }
  0xe1   : > { %6040 = vmatpush3.msk.msra.mxu1 %vm216_vm1, %v6483_v31  ;;  %6041 = vmatprep.mubr.msk.f32.mxu1 %vm6323_vm0, %v6322_v0 }
  0xe2   : > { %5782 = vmatmul.mubr.msk.f32.vlgmr.msra.gmra.mrb[2].mxu0 %vm212_vm3, %v6480_v30  ;;  %6044 = vmatprep.subr.mxu1 %v6322_v0 }
  0xe3   : > { %5786 = vmatpush1.msk.msra.mxu0 %vm216_vm1, %v6515_v38  ;;  %2157 = vmatprep.mubr.f32.mxu0 %v6322_v0 }
  0xe4   : > { %5790 = vmatprep.subr.msk.mxu0 %vm216_vm1, %v6525_v40 }
  0xe8   : > { %6042 = vmatmul.mubr.msk.f32.vlgmr.msra.gmra.mrb[2].mxu1 %vm212_vm3, %v6510_v36 }
  0xe9   : > { %6045 = vmatpush3.msk.msra.mxu1 %vm216_vm1, %v6512_v37  ;;  %6046 = vmatprep.mubr.msk.f32.mxu1 %vm6323_vm0, %v6322_v0 }
  0xea   : > { %5787 = vmatmul.mubr.msk.f32.vlgmr.msra.gmra.mrb[2].mxu0 %vm212_vm3, %v6510_v36  ;;  %6049 = vmatprep.subr.mxu1 %v6322_v0 }
  0xeb   : > { %5791 = vmatpush1.msk.msra.mxu0 %vm216_vm1, %v6543_v44  ;;  %2301 = vmatprep.mubr.f32.mxu0 %v6322_v0 }
  0xec   : > { %5795 = vmatprep.subr.msk.mxu0 %vm216_vm1, %v6711_v6 }
  0xf0   : > { %6047 = vmatmul.mubr.msk.f32.vlgmr.msra.gmra.mrb[2].mxu1 %vm212_vm3, %v6540_v43 }
  0xf1   : > { %6050 = vmatpush3.msk.msra.mxu1 %vm216_vm1, %v6701_v4  ;;  %6051 = vmatprep.mubr.msk.f32.mxu1 %vm6323_vm0, %v6322_v0 }
  0xf2   : > { %5792 = vmatmul.mubr.msk.f32.vlgmr.msra.gmra.mrb[2].mxu0 %vm212_vm3, %v6540_v43  ;;  %6054 = vmatprep.subr.mxu1 %v6322_v0 }
  0xf3   : > { %5796 = vmatpush1.msk.msra.mxu0 %vm216_vm1, %v6722_v8  ;;  %2460 = vmatprep.mubr.f32.mxu0 %v6322_v0 }
  0xf4   : > { %5800 = vmatprep.subr.msk.mxu0 %vm216_vm1, %v6581_v52 }
  0xf8   : > { %6052 = vmatmul.mubr.msk.f32.vlgmr.msra.gmra.mrb[2].mxu1 %vm212_vm3, %v6566_v48 }
  0xf9   : > { %6055 = vmatpush3.msk.msra.mxu1 %vm216_vm1, %v6573_v51  ;;  %6056 = vmatprep.mubr.msk.f32.mxu1 %vm6323_vm0, %v6322_v0 }
  0xfa   : > { %5797 = vmatmul.mubr.msk.f32.vlgmr.msra.gmra.mrb[2].mxu0 %vm212_vm3, %v6566_v48  ;;  %6059 = vmatprep.subr.mxu1 %v6322_v0 }
  0xfb   : > { %5801 = vmatpush1.msk.msra.mxu0 %vm216_vm1, %v6599_v56  ;;  %2604 = vmatprep.mubr.f32.mxu0 %v6322_v0 }
  0xfc   : > { %5805 = vmatprep.subr.msk.mxu0 %vm216_vm1, %v6609_v57 }
 0x100   : > { %6057 = vmatmul.mubr.msk.f32.vlgmr.msra.gmra.mrb[2].mxu1 %vm212_vm3, %v6594_v53 }
 0x101   : > { %6060 = vmatpush3.msk.msra.mxu1 %vm216_vm1, %v6596_v54  ;;  %6061 = vmatprep.mubr.msk.f32.mxu1 %vm6323_vm0, %v6322_v0 }
 0x102   : > { %5802 = vmatmul.mubr.msk.f32.vlgmr.msra.gmra.mrb[2].mxu0 %vm212_vm3, %v6594_v53  ;;  %6064 = vmatprep.subr.mxu1 %v6322_v0 }
 0x103   : > { %5806 = vmatpush1.msk.msra.mxu0 %vm216_vm1, %v6625_v60  ;;  %2748 = vmatprep.mubr.f32.mxu0 %v6322_v0 }
 0x104   : > { %5810 = vmatprep.subr.msk.mxu0 %vm216_vm1, %v6762_v11 }
 0x108   : > { %6062 = vmatmul.mubr.msk.f32.vlgmr.msra.gmra.mrb[2].mxu1 %vm212_vm3, %v6622_v59 }
 0x109   : > { %6065 = vmatpush3.msk.msra.mxu1 %vm216_vm1, %v6752_v9  ;;  %6066 = vmatprep.mubr.msk.f32.mxu1 %vm6323_vm0, %v6322_v0 }
 0x10a   : > { %5807 = vmatmul.mubr.msk.f32.vlgmr.msra.gmra.mrb[2].mxu0 %vm212_vm3, %v6622_v59  ;;  %6069 = vmatprep.subr.mxu1 %v6322_v0 }
 0x10b   : > { %5811 = vmatpush1.msk.msra.mxu0 %vm216_vm1, %v6773_v13  ;;  %2906 = vmatprep.mubr.f32.mxu0 %v6322_v0 }
 0x10c   : > { %5815 = vmatprep.subr.msk.mxu0 %vm216_vm1, %v6497_v33 }
 0x110   : > { %6067 = vmatmul.mubr.msk.f32.vlgmr.msra.gmra.mrb[2].mxu1 %vm212_vm3, %v6644_v61 }
 0x111   : > { %6070 = vmatpush3.msk.msra.mxu1 %vm216_vm1, %v6483_v31  ;;  %6071 = vmatprep.mubr.msk.f32.mxu1 %vm6323_vm0, %v6322_v0 }
 0x112   : > { %5812 = vmatmul.mubr.msk.f32.vlgmr.msra.gmra.mrb[2].mxu0 %vm212_vm3, %v6644_v61  ;;  %6074 = vmatprep.subr.mxu1 %v6322_v0 }
 0x113   : > { %5816 = vmatpush1.msk.msra.mxu0 %vm216_vm1, %v6515_v38  ;;  %3053 = vmatprep.mubr.f32.mxu0 %v6322_v0 }
 0x114   : > { %5820 = vmatprep.subr.msk.mxu0 %vm216_vm1, %v6466_v27  ;;  %6072 = vmatmul.mubr.msk.f32.vlgmr.msra.gmra.mrb[4].mxu1 %vm212_vm3, %v6408_v16  ;;  %v6893_v27 = vsel %vm4012_vm9, %v4007_v21, %v4009_v19 }
 0x115   : > { %6075 = vmatpush3.msk.msra.mxu1 %vm216_vm1, %v6453_v25  ;;  %6076 = vmatprep.mubr.msk.f32.mxu1 %vm6323_vm0, %v6322_v0  ;;  %v6890_v25 = vpop.permute.xlu0 %4169 }
 0x116   : > { %5817 = vmatmul.mubr.msk.f32.vlgmr.msra.gmra.mrb[4].mxu0 %vm212_vm3, %v6408_v16  ;;  %6079 = vmatprep.subr.mxu1 %v6322_v0  ;;  %v6903_v28 = vsel %vm4012_vm9, %v4168_v26, %v6890_v25 }
 0x117   : > { %5821 = vmatpush1.msk.msra.mxu0 %vm216_vm1, %v6486_v32  ;;  %3194 = vmatprep.mubr.f32.mxu0 %v6322_v0  ;;  %v6914_v32 = vsel %vm4012_vm9, %v4166_v29, %v4168_v26 }
 0x118   : > { %5825 = vmatprep.subr.msk.mxu0 %vm216_vm1, %v6525_v40 }
 0x11c   : > { %6077 = vmatmul.mubr.msk.f32.vlgmr.msra.gmra.mrb[4].mxu1 %vm212_vm3, %v6449_v23 }
 0x11d   : > { %6080 = vmatpush3.msk.msra.mxu1 %vm216_vm1, %v6512_v37  ;;  %6081 = vmatprep.mubr.msk.f32.mxu1 %vm6323_vm0, %v6322_v0 }
 0x11e   : > { %5822 = vmatmul.mubr.msk.f32.vlgmr.msra.gmra.mrb[4].mxu0 %vm212_vm3, %v6449_v23  ;;  %6084 = vmatprep.subr.mxu1 %v6322_v0 }
 0x11f   : > { %5826 = vmatpush1.msk.msra.mxu0 %vm216_vm1, %v6543_v44  ;;  %3335 = vmatprep.mubr.f32.mxu0 %v6322_v0 }
 0x120   : > { %5830 = vmatprep.subr.msk.mxu0 %vm216_vm1, %v6553_v45 }
 0x124   : > { %6082 = vmatmul.mubr.msk.f32.vlgmr.msra.gmra.mrb[4].mxu1 %vm212_vm3, %v6480_v30 }
 0x125   : > { %6085 = vmatpush3.msk.msra.mxu1 %vm216_vm1, %v6535_v42  ;;  %6086 = vmatprep.mubr.msk.f32.mxu1 %vm6323_vm0, %v6322_v0 }
 0x126   : > { %5827 = vmatmul.mubr.msk.f32.vlgmr.msra.gmra.mrb[4].mxu0 %vm212_vm3, %v6480_v30  ;;  %6089 = vmatprep.subr.mxu1 %v6322_v0 }
 0x127   : > { %5831 = vmatpush1.msk.msra.mxu0 %vm216_vm1, %v6569_v49  ;;  %3479 = vmatprep.mubr.f32.mxu0 %v6322_v0 }
 0x128   : > { %5835 = vmatprep.subr.msk.mxu0 %vm216_vm1, %v6581_v52 }
 0x12c   : > { %6087 = vmatmul.mubr.msk.f32.vlgmr.msra.gmra.mrb[4].mxu1 %vm212_vm3, %v6510_v36 }
 0x12d   : > { %6090 = vmatpush3.msk.msra.mxu1 %vm216_vm1, %v6573_v51  ;;  %6091 = vmatprep.mubr.msk.f32.mxu1 %vm6323_vm0, %v6322_v0 }
 0x12e   : > { %5832 = vmatmul.mubr.msk.f32.vlgmr.msra.gmra.mrb[4].mxu0 %vm212_vm3, %v6510_v36  ;;  %6094 = vmatprep.subr.mxu1 %v6322_v0 }
 0x12f   : > { %5836 = vmatpush1.msk.msra.mxu0 %vm216_vm1, %v6599_v56  ;;  %3623 = vmatprep.mubr.f32.mxu0 %v6322_v0 }
 0x130   : > { %5840 = vmatprep.subr.msk.mxu0 %vm216_vm1, %v6609_v57 }
 0x134   : > { %6092 = vmatmul.mubr.msk.f32.vlgmr.msra.gmra.mrb[4].mxu1 %vm212_vm3, %v6540_v43 }
 0x135   : > { %6095 = vmatpush3.msk.msra.mxu1 %vm216_vm1, %v6596_v54  ;;  %6096 = vmatprep.mubr.msk.f32.mxu1 %vm6323_vm0, %v6322_v0 }
 0x136   : > { %5837 = vmatmul.mubr.msk.f32.vlgmr.msra.gmra.mrb[4].mxu0 %vm212_vm3, %v6540_v43  ;;  %6099 = vmatprep.subr.mxu1 %v6322_v0 }
 0x137   : > { %5841 = vmatpush1.msk.msra.mxu0 %vm216_vm1, %v6625_v60  ;;  %3767 = vmatprep.mubr.f32.mxu0 %v6322_v0 }
 0x138   : > { %5845 = vmatprep.subr.msk.mxu0 %vm216_vm1, %v3855_v17 }
 0x13c   : > { %6097 = vmatmul.mubr.msk.f32.vlgmr.msra.gmra.mrb[4].mxu1 %vm212_vm3, %v6566_v48 }
 0x13d   : > { %6100 = vmatpush3.msk.msra.mxu1 %vm216_vm1, %v3852_v15  ;;  %6101 = vmatprep.mubr.msk.f32.mxu1 %vm6323_vm0, %v6322_v0 }
 0x13e   : > { %5842 = vmatmul.mubr.msk.f32.vlgmr.msra.gmra.mrb[4].mxu0 %vm212_vm3, %v6566_v48  ;;  %6104 = vmatprep.subr.mxu1 %v6322_v0 }
 0x13f   : > { %5846 = vmatpush1.msk.msra.mxu0 %vm216_vm1, %v3854_v20  ;;  %3926 = vmatprep.mubr.f32.mxu0 %v6322_v0 }
 0x140   : > { %5850 = vmatprep.subr.msk.mxu0 %vm216_vm1, %v6881_v24 }
 0x144   : > { %6102 = vmatmul.mubr.msk.f32.vlgmr.msra.gmra.mrb[4].mxu1 %vm212_vm3, %v6594_v53 }
 0x145   : > { %6105 = vmatpush3.msk.msra.mxu1 %vm216_vm1, %v6874_v22  ;;  %6106 = vmatprep.mubr.msk.f32.mxu1 %vm6323_vm0, %v6322_v0 }
 0x146   : > { %5847 = vmatmul.mubr.msk.f32.vlgmr.msra.gmra.mrb[4].mxu0 %vm212_vm3, %v6594_v53  ;;  %6109 = vmatprep.subr.mxu1 %v6322_v0 }
 0x147   : > { %5851 = vmatpush1.msk.msra.mxu0 %vm216_vm1, %v6893_v27  ;;  %4085 = vmatprep.mubr.f32.mxu0 %v6322_v0 }
 0x148   : > { %5855 = vmatprep.subr.msk.mxu0 %vm216_vm1, %v6903_v28 }
 0x14c   : > { %6107 = vmatmul.mubr.msk.f32.vlgmr.msra.gmra.mrb[4].mxu1 %vm212_vm3, %v6622_v59 }
 0x14d   : > { %6110 = vmatpush3.msk.msra.mxu1 %vm216_vm1, %v6890_v25  ;;  %6111 = vmatprep.mubr.msk.f32.mxu1 %vm6323_vm0, %v6322_v0 }
 0x14e   : > { %5852 = vmatmul.mubr.msk.f32.vlgmr.msra.gmra.mrb[4].mxu0 %vm212_vm3, %v6622_v59  ;;  %6114 = vmatprep.subr.mxu1 %v6322_v0 }
 0x14f   : > { %5856 = vmatpush1.msk.msra.mxu0 %vm216_vm1, %v6914_v32  ;;  %4243 = vmatprep.mubr.f32.mxu0 %v6322_v0 }
 0x150   : > { %5860 = vmatprep.subr.msk.mxu0 %vm216_vm1, %v6525_v40 }
 0x154   : > { %6112 = vmatmul.mubr.msk.f32.vlgmr.msra.gmra.mrb[4].mxu1 %vm212_vm3, %v6644_v61 }
 0x155   : > { %6115 = vmatpush3.msk.msra.mxu1 %vm216_vm1, %v6512_v37  ;;  %6116 = vmatprep.mubr.msk.f32.mxu1 %vm6323_vm0, %v6322_v0 }
 0x156   : > { %5857 = vmatmul.mubr.msk.f32.vlgmr.msra.gmra.mrb[4].mxu0 %vm212_vm3, %v6644_v61  ;;  %6119 = vmatprep.subr.mxu1 %v6322_v0 }
 0x157   : > { %5861 = vmatpush1.msk.msra.mxu0 %vm216_vm1, %v6543_v44  ;;  %4390 = vmatprep.mubr.f32.mxu0 %v6322_v0 }
 0x158   : > { %5865 = vmatprep.subr.msk.mxu0 %vm216_vm1, %v6497_v33  ;;  %6117 = vmatmul.mubr.msk.f32.vlgmr.msra.gmra.mrb[6].mxu1 %vm212_vm3, %v6408_v16 }
 0x159   : > { %6120 = vmatpush3.msk.msra.mxu1 %vm216_vm1, %v6483_v31  ;;  %6121 = vmatprep.mubr.msk.f32.mxu1 %vm6323_vm0, %v6322_v0  ;;  %v5475_v31 = vpop.permute.xlu0 %5474 }
 0x15a   : > { %5862 = vmatmul.mubr.msk.f32.vlgmr.msra.gmra.mrb[6].mxu0 %vm212_vm3, %v6408_v16  ;;  %6124 = vmatprep.subr.mxu1 %v6322_v0  ;;  %v6332_v16 = vmov 0  }
 0x15b   : > { %5866 = vmatpush1.msk.msra.mxu0 %vm216_vm1, %v6515_v38  ;;  %4531 = vmatprep.mubr.f32.mxu0 %v6322_v0 }
 0x15c   : > { %5870 = vmatprep.subr.msk.mxu0 %vm216_vm1, %v6711_v6  ;;  %6308 = vset.pattern.permute.xlu1 %v6332_v16 }
 0x15d   : > { %6309 = vset.pattern.permute.xlu0 %v6332_v16  ;;  %v5473_v34 = vpop.permute.xlu0 %5472 }
 0x15e   : > { %v5479_v35 = vsel %vm5478_vm10, %v5473_v34, %v5475_v31 }
 0x160   : > { %6122 = vmatmul.mubr.msk.f32.vlgmr.msra.gmra.mrb[6].mxu1 %vm212_vm3, %v6449_v23 }
 0x161   : > { %6125 = vmatpush3.msk.msra.mxu1 %vm216_vm1, %v6701_v4  ;;  %6126 = vmatprep.mubr.msk.f32.mxu1 %vm6323_vm0, %v6322_v0 }
 0x162   : > { %5867 = vmatmul.mubr.msk.f32.vlgmr.msra.gmra.mrb[6].mxu0 %vm212_vm3, %v6449_v23  ;;  %6129 = vmatprep.subr.mxu1 %v6322_v0  ;;  %v199_v23 = vld [vmem:[%s7066_s2] sm:$0xff] }
 0x163   : > { %5871 = vmatpush1.msk.msra.mxu0 %vm216_vm1, %v6722_v8  ;;  %4672 = vmatprep.mubr.f32.mxu0 %v6322_v0 }
 0x164   : > { %5875 = vmatprep.subr.msk.mxu0 %vm216_vm1, %v6581_v52  ;;  %5636 = vperm.xlu1 %6308, %v199_v23  }
 0x168   : > { %6127 = vmatmul.mubr.msk.f32.vlgmr.msra.gmra.mrb[6].mxu1 %vm212_vm3, %v6480_v30 }
 0x169   : > { %6130 = vmatpush3.msk.msra.mxu1 %vm216_vm1, %v6573_v51  ;;  %6131 = vmatprep.mubr.msk.f32.mxu1 %vm6323_vm0, %v6322_v0 }
 0x16a   : > { %5872 = vmatmul.mubr.msk.f32.vlgmr.msra.gmra.mrb[6].mxu0 %vm212_vm3, %v6480_v30  ;;  %6134 = vmatprep.subr.mxu1 %v6322_v0  ;;  %v5477_v30 = vpop.permute.xlu1 %5476 }
 0x16b   : > { %5876 = vmatpush1.msk.msra.mxu0 %vm216_vm1, %v6599_v56  ;;  %4816 = vmatprep.mubr.f32.mxu0 %v6322_v0  ;;  %v5480_v33 = vsel %vm5478_vm10, %v5475_v31, %v5477_v30 }
 0x16c   : > { %5880 = vmatprep.subr.msk.mxu0 %vm216_vm1, %v6609_v57 }
 0x170   : > { %6132 = vmatmul.mubr.msk.f32.vlgmr.msra.gmra.mrb[6].mxu1 %vm212_vm3, %v6510_v36 }
 0x171   : > { %6135 = vmatpush3.msk.msra.mxu1 %vm216_vm1, %v6596_v54  ;;  %6136 = vmatprep.mubr.msk.f32.mxu1 %vm6323_vm0, %v6322_v0 }
 0x172   : > { %5877 = vmatmul.mubr.msk.f32.vlgmr.msra.gmra.mrb[6].mxu0 %vm212_vm3, %v6510_v36  ;;  %6139 = vmatprep.subr.mxu1 %v6322_v0 }
 0x173   : > { %5881 = vmatpush1.msk.msra.mxu0 %vm216_vm1, %v6625_v60  ;;  %4960 = vmatprep.mubr.f32.mxu0 %v6322_v0 }
 0x174   : > { %5885 = vmatprep.subr.msk.mxu0 %vm216_vm1, %v6762_v11 }
 0x178   : > { %6137 = vmatmul.mubr.msk.f32.vlgmr.msra.gmra.mrb[6].mxu1 %vm212_vm3, %v6540_v43 }
 0x179   : > { %6140 = vmatpush3.msk.msra.mxu1 %vm216_vm1, %v6752_v9  ;;  %6141 = vmatprep.mubr.msk.f32.mxu1 %vm6323_vm0, %v6322_v0 }
 0x17a   : > { %5882 = vmatmul.mubr.msk.f32.vlgmr.msra.gmra.mrb[6].mxu0 %vm212_vm3, %v6540_v43  ;;  %6144 = vmatprep.subr.mxu1 %v6322_v0 }
 0x17b   : > { %5886 = vmatpush1.msk.msra.mxu0 %vm216_vm1, %v6773_v13  ;;  %5104 = vmatprep.mubr.f32.mxu0 %v6322_v0 }
 0x17c   : > { %5890 = vmatprep.subr.msk.mxu0 %vm216_vm1, %v6881_v24 }
 0x180   : > { %6142 = vmatmul.mubr.msk.f32.vlgmr.msra.gmra.mrb[6].mxu1 %vm212_vm3, %v6566_v48 }
 0x181   : > { %6145 = vmatpush3.msk.msra.mxu1 %vm216_vm1, %v6874_v22  ;;  %6146 = vmatprep.mubr.msk.f32.mxu1 %vm6323_vm0, %v6322_v0 }
 0x182   : > { %5887 = vmatmul.mubr.msk.f32.vlgmr.msra.gmra.mrb[6].mxu0 %vm212_vm3, %v6566_v48  ;;  %6149 = vmatprep.subr.mxu1 %v6322_v0 }
 0x183   : > { %5891 = vmatpush1.msk.msra.mxu0 %vm216_vm1, %v6893_v27  ;;  %5248 = vmatprep.mubr.f32.mxu0 %v6322_v0 }
 0x184   : > { %5895 = vmatprep.subr.msk.mxu0 %vm216_vm1, %v6903_v28 }
 0x188   : > { %6147 = vmatmul.mubr.msk.f32.vlgmr.msra.gmra.mrb[6].mxu1 %vm212_vm3, %v6594_v53 }
 0x189   : > { %6150 = vmatpush3.msk.msra.mxu1 %vm216_vm1, %v6890_v25  ;;  %6151 = vmatprep.mubr.msk.f32.mxu1 %vm6323_vm0, %v6322_v0 }
 0x18a   : > { %5892 = vmatmul.mubr.msk.f32.vlgmr.msra.gmra.mrb[6].mxu0 %vm212_vm3, %v6594_v53  ;;  %6154 = vmatprep.subr.mxu1 %v6322_v0 }
 0x18b   : > { %5896 = vmatpush1.msk.msra.mxu0 %vm216_vm1, %v6914_v32  ;;  %5392 = vmatprep.mubr.f32.mxu0 %v6322_v0 }
 0x18c   : > { %5900 = vmatprep.subr.msk.mxu0 %vm216_vm1, %v5480_v33 }
 0x190   : > { %6152 = vmatmul.mubr.msk.f32.vlgmr.msra.gmra.mrb[6].mxu1 %vm212_vm3, %v6622_v59 }
 0x191   : > { %6155 = vmatpush3.msk.msra.mxu1 %vm216_vm1, %v5477_v30  ;;  %6156 = vmatprep.mubr.msk.f32.mxu1 %vm6323_vm0, %v6322_v0 }
 0x192   : > { %5897 = vmatmul.mubr.msk.f32.vlgmr.msra.gmra.mrb[6].mxu0 %vm212_vm3, %v6622_v59 }
 0x193   : > { %5901 = vmatpush1.msk.msra.mxu0 %vm216_vm1, %v5479_v35  ;;  %5551 = vmatprep.mubr.f32.mxu0 %v6322_v0 }
 0x198   : > { %6157 = vmatmul.mubr.msk.f32.vlgmr.msra.gmra.mrb[6].mxu1 %vm212_vm3, %v6644_v61 }
 0x19a   : > { %5902 = vmatmul.mubr.msk.f32.vlgmr.msra.gmra.mrb[6].mxu0 %vm212_vm3, %v6644_v61 }
 0x19f   : > { %v1645_v36 = vpop.f32.mrb[0].mxu1 }
 0x1a0   : > { %v6023_v37 = vpop.f32.mrb[1].mxu1 }
 0x1a1   : > { %v1574_v38 = vpop.f32.mrb[0].mxu0 }
 0x1a2   : > { %v1576_v39 = vpop.f32.mrb[1].mxu0 }
 0x1e3   : > { %v2979_v40 = vpop.f32.mrb[2].mxu1  ;;  %v5637_v54 = vpop.permute.xlu1 %5636 }
 0x1e4   : > { %v2988_v41 = vmax.f32 %v1645_v36, %v2979_v40  ;;  %v6068_v42 = vpop.f32.mrb[3].mxu1 }
 0x1e5   : > { %v2908_v43 = vpop.f32.mrb[2].mxu0 }
 0x1e6   : > { %v2986_v44 = vmax.f32 %v1574_v38, %v2908_v43  ;;  %v2910_v45 = vpop.f32.mrb[3].mxu0 }
 0x1e7   : > { %v2987_v46 = vmax.f32 %v1576_v39, %v2910_v45 }
 0x227   : > { %v4316_v47 = vpop.f32.mrb[4].mxu1 }
 0x228   : > { %v4325_v0 = vmax.f32 %v2988_v41, %v4316_v47  ;;  %v6113_v48 = vpop.f32.mrb[5].mxu1 }
 0x229   : > { %v4245_v49 = vpop.f32.mrb[4].mxu0 }
 0x22a   : > { %v4323_v50 = vmax.f32 %v2986_v44, %v4245_v49  ;;  %v4247_v51 = vpop.f32.mrb[5].mxu0 }
 0x22b   : > { %v4324_v52 = vmax.f32 %v2987_v46, %v4247_v51 }
 0x26b   : > { %v5624_v53 = vpop.f32.mrb[6].mxu1 }
 0x26c   : > { %v5633_v55 = vmax.f32 %v4325_v0, %v5624_v53  ;;  %v6158_v56 = vpop.f32.mrb[7].mxu1 }
 0x26d   : > { %v5553_v57 = vpop.f32.mrb[6].mxu0 }
 0x26e   : > { %v5631_v58 = vmax.f32 %v4323_v50, %v5553_v57  ;;  %v5641_v59 = vadd.f32 %v5637_v54, %v5633_v55  ;;  %v5555_v60 = vpop.f32.mrb[7].mxu0 }
 0x26f   : > { %v5632_v61 = vmax.f32 %v4324_v52, %v5555_v60 }
 0x270   : > { %v5639_v62 = vadd.f32 %v5637_v54, %v5631_v58  ;;  %v5644_v63 = vmax.f32 %v5641_v59, 0.0 }
 0x271   : > { %v5640_v1 = vadd.f32 %v5637_v54, %v5632_v61 }
 0x272   : > { %v5642_v2 = vmax.f32 %v5639_v62, 0.0  ;;  %5648 = vst.msk [vmem:[%s170_s24 + $0x10] sm:$0xff] %vm5647_vm11, %v5644_v63 }
 0x273   : > { %v5643_v3 = vmax.f32 %v5640_v1, 0.0 }
 0x274   : > { %5645 = vst [vmem:[%s170_s24] sm:$0xff] %v5642_v2 }
 0x275   : > { %5646 = vst [vmem:[%s170_s24 + $0x8] sm:$0xff] %v5643_v3 }
 0x276 PF: > { %s13_s12 = sadd.s32 1, %s6320_s12  }
 0x277   : > { %p10_p4 = scmp.ge.s32.totalorder %s13_s12, 4  }
 0x279   :  { %12 = sbr.rel (!%p10_p4) target bundleno = 1 (0x1), region = 73 }

// kernel: mycnn_forward.4
= control target key start
LH: loop header
LB: loop body
LE: loop exit
PB: predicated region body
PF: predicated region fallthrough
CT: control target
= control target key end

     0   :  { %s3318_s12 = smov 0   ;;  %s3583_s0 = inlined_call_operand.vmem [shape: f32[2,4,8,122], index: 0, kind: input, shape index: {}]   ;;  %s3584_s1 = inlined_call_operand.vmem [shape: f32[9,8,8], index: 1, kind: input, shape index: {}]   ;;  %s3585_s2 = inlined_call_operand.vmem [shape: f32[8,1], index: 2, kind: input, shape index: {}]   ;;  %s3586_s3 = inlined_call_operand.vmem [shape: f32[2,8,100], index: 3, kind: output, shape index: {}]  }
   0x1 LB: > { %s2884_s13 = sadd.s32 4294967295, %s3285_s12   ;;  %p2888_p0 = scmp.ge.s32.totalorder %s3285_s12, 1  ;;  %s3285_s12 = sphi %s3318_s12, %s13_s12  }
   0x2   : > { %p137_p1 = scmp.lt.s32.totalorder %s3285_s12, 3 }
   0x4   : > { %p138_p2 = pnand %p2888_p0, %p137_p1 }
   0x5   : > { %p160_p3 = scmp.lt.s32.totalorder (!%p138_p2), %s2884_s13, 1  ;;  %v3287_v0 = vmov (!%p138_p2), 0.0   ;;  %vm3288_vm0 = vmmov (!%p138_p2), 0   ;;  %s3289_s18 = smov (!%p138_p2), 127   ;;  %v3341_v5 = vld [vmem:[%s3584_s1 + $0x8] sm:$0xff] (!%p138_p2)  ;;  %vm198_vm1 = vcmask (!%p138_p2), 64512  }
   0x6   : > { %141 = sbr.rel (%p138_p2) target bundleno = 488 (0x1e8), region = 32  ;;  %3014 = vmatprep.subr.mxu0 (!%p138_p2), %v3287_v0  ;;  %3016 = vmatprep.mubr.msk.f32.mxu0 (!%p138_p2), %vm3288_vm0, %v3287_v0  ;;  %s3290_s19 = smov (!%p138_p2), 126   ;;  %v3355_v8 = vld [vmem:[%s3584_s1] sm:$0xff] (!%p138_p2)  ;;  %v3297_v11 = vmov (!%p138_p2), 0   ;;  %v3373_v12 = vld [vmem:[%s3584_s1 + $0x10] sm:$0xff] (!%p138_p2)  ;;  %v3394_v15 = vld [vmem:[%s3584_s1 + $0x18] sm:$0xff] (!%p138_p2) }
   0x7   : > { %3059 = vmatprep.subr.mxu1 (!%p138_p2), %v3287_v0  ;;  %3061 = vmatprep.mubr.msk.f32.mxu1 (!%p138_p2), %vm3288_vm0, %v3287_v0  ;;  %s3291_s20 = smov (!%p138_p2), 118   ;;  %s3292_s21 = smov (!%p138_p2), 117   ;;  %v193_v10 = vld [vmem:[%s3585_s2] sm:$0xff] (!%p138_p2)  ;;  %v3429_v19 = vld [vmem:[%s3584_s1 + $0x28] sm:$0xff] (!%p138_p2)  ;;  %v3444_v22 = vld [vmem:[%s3584_s1 + $0x30] sm:$0xff] (!%p138_p2)  ;;  %vm2829_vm2 = vcmask (!%p138_p2), 818176  }
   0x8   : > { %s3293_s22 = smov (!%p138_p2), 116   ;;  %s3294_s23 = smov (!%p138_p2), 108   ;;  %3277 = vset.pattern.permute.xlu1 (!%p138_p2), %v3297_v11  ;;  %3278 = vset.pattern.permute.xlu0 (!%p138_p2), %v3297_v11  ;;  %v3413_v17 = vld [vmem:[%s3584_s1 + $0x20] sm:$0xff] (!%p138_p2)  ;;  %v3459_v24 = vld [vmem:[%s3584_s1 + $0x38] sm:$0xff] (!%p138_p2) }
   0x9   : > { %s3295_s24 = smov (!%p138_p2), 107   ;;  %s3296_s25 = smov (!%p138_p2), 106   ;;  %v3474_v26 = vld [vmem:[%s3584_s1 + $0x40] sm:$0xff] (!%p138_p2) }
   0xd   : > { %s3588_s13 = smov (!%p160_p3, %s2884_s13), 1 }
   0xe   : > { %s2941_s14 = sshll.u32 %s3588_s13, 5 }
   0xf   : > { %s164_s17 = scalar_lea.vmem %s3583_s0, %s2941_s14 }
  0x10   : > { %v2893_v1 = vld [vmem:[%s164_s17 + $0x10] sm:$0xff]  ;;  %v2894_v2 = vld [vmem:[%s164_s17 + $0x18] sm:$0xff]  ;;  %v2892_v3 = vld [vmem:[%s164_s17 + $0x8] sm:$0xff] }
  0x11   : > { %195 = vrot.lane.b32.xlu0 %v2893_v1, %s3289_s18  ;;  %1027 = vrot.lane.b32.xlu1 %v2893_v1, %s3290_s19  ;;  %v169_v4 = vld [vmem:[%s164_s17] sm:$0xff] }
  0x15   : > { %346 = vrot.lane.b32.xlu0 %v2894_v2, %s3289_s18  ;;  %424 = vrot.lane.b32.xlu1 %v2892_v3, %s3291_s20 }
  0x19   : > { %502 = vrot.lane.b32.xlu0 %v169_v4, %s3292_s21  ;;  %579 = vrot.lane.b32.xlu1 %v2892_v3, %s3292_s21 }
  0x1d   : > { %1243 = vrot.lane.b32.xlu0 %v169_v4, %s3293_s22  ;;  %656 = vrot.lane.b32.xlu1 %v2894_v2, %s3291_s20 }
  0x21   : > { %733 = vrot.lane.b32.xlu0 %v2893_v1, %s3292_s21  ;;  %810 = vrot.lane.b32.xlu1 %v2894_v2, %s3292_s21  ;;  %s2891_s21 = sshll.u32 %s3588_s13, 3 }
  0x25   : > { %1459 = vrot.lane.b32.xlu0 %v2893_v1, %s3293_s22  ;;  %1958 = vrot.lane.b32.xlu1 %v2892_v3, %s3294_s23 }
  0x29   : > { %2032 = vrot.lane.b32.xlu0 %v169_v4, %s3295_s24  ;;  %2106 = vrot.lane.b32.xlu1 %v2892_v3, %s3295_s24  ;;  %s168_s24 = scalar_lea.vmem %s3586_s3, %s2891_s21 }
  0x2d   : > { %2747 = vrot.lane.b32.xlu0 %v169_v4, %s3296_s25  ;;  %2824 = vperm.xlu1 %3277, %v193_v10  }
  0x83   : > { %v196_v6 = vpop.permute.xlu0 %195  ;;  %v1028_v9 = vpop.permute.xlu1 %1027 }
  0x84   : > { %3015 = vmatpush3.msra.mxu0 %v196_v6 }
  0x85   : > { %3017 = vmatmul.mubr.msk.f32.vlgmr.msra.gmra.mrb[0].mxu0 %vm198_vm1, %v3341_v5  ;;  %3019 = vmatprep.subr.mxu0 %v3287_v0 }
  0x86   : > { %3020 = vmatpush3.msra.mxu0 %v2894_v2  ;;  %3021 = vmatprep.mubr.msk.f32.mxu0 %vm3288_vm0, %v3287_v0 }
  0x87   : > { %v347_v7 = vpop.permute.xlu0 %346  ;;  %3024 = vmatprep.subr.mxu0 %v3287_v0  ;;  %v3377_v13 = vpop.permute.xlu1 %424 }
  0x88   : > { %3060 = vmatpush3.msra.mxu1 %v347_v7 }
  0x89   : > { %3062 = vmatmul.mubr.msk.f32.vlgmr.msra.gmra.mrb[0].mxu1 %vm198_vm1, %v3341_v5  ;;  %3064 = vmatprep.subr.mxu1 %v3287_v0 }
  0x8a   : > { %3065 = vmatpush3.msra.mxu1 %v196_v6  ;;  %3066 = vmatprep.mubr.msk.f32.mxu1 %vm3288_vm0, %v3287_v0 }
  0x8b   : > { %3069 = vmatprep.subr.mxu1 %v3287_v0  ;;  %v3385_v14 = vpop.permute.xlu0 %502  ;;  %v3404_v16 = vpop.permute.xlu1 %579 }
  0x8d   : > { %3022 = vmatmul.mubr.msk.f32.vlgmr.msra.gmra.mrb[0].mxu0 %vm198_vm1, %v3355_v8 }
  0x8e   : > { %3025 = vmatpush3.msra.mxu0 %v347_v7  ;;  %3026 = vmatprep.mubr.msk.f32.mxu0 %vm3288_vm0, %v3287_v0 }
  0x8f   : > { %3029 = vmatprep.subr.mxu0 %v3287_v0  ;;  %v1244_v18 = vpop.permute.xlu0 %1243  ;;  %v657_v20 = vpop.permute.xlu1 %656 }
  0x91   : > { %3067 = vmatmul.mubr.msk.f32.vlgmr.msra.gmra.mrb[0].mxu1 %vm198_vm1, %v3355_v8 }
  0x92   : > { %3070 = vmatpush3.msra.mxu1 %v1028_v9  ;;  %3071 = vmatprep.mubr.msk.f32.mxu1 %vm3288_vm0, %v3287_v0 }
  0x93   : > { %3074 = vmatprep.subr.mxu1 %v3287_v0  ;;  %v734_v21 = vpop.permute.xlu0 %733  ;;  %v811_v23 = vpop.permute.xlu1 %810 }
  0x95   : > { %3027 = vmatmul.mubr.msk.f32.vlgmr.msra.gmra.mrb[0].mxu0 %vm198_vm1, %v3373_v12 }
  0x96   : > { %3030 = vmatpush3.msra.mxu0 %v3377_v13  ;;  %3031 = vmatprep.mubr.msk.f32.mxu0 %vm3288_vm0, %v3287_v0 }
  0x97   : > { %3034 = vmatprep.subr.mxu0 %v3287_v0  ;;  %v1460_v25 = vpop.permute.xlu0 %1459  ;;  %v1959_v27 = vpop.permute.xlu1 %1958 }
  0x99   : > { %3072 = vmatmul.mubr.msk.f32.vlgmr.msra.gmra.mrb[0].mxu1 %vm198_vm1, %v3373_v12 }
  0x9a   : > { %3075 = vmatpush3.msra.mxu1 %v3385_v14  ;;  %3076 = vmatprep.mubr.msk.f32.mxu1 %vm3288_vm0, %v3287_v0 }
  0x9b   : > { %3079 = vmatprep.subr.mxu1 %v3287_v0  ;;  %v2033_v28 = vpop.permute.xlu0 %2032  ;;  %v2107_v29 = vpop.permute.xlu1 %2106 }
  0x9d   : > { %3032 = vmatmul.mubr.msk.f32.vlgmr.msra.gmra.mrb[0].mxu0 %vm198_vm1, %v3394_v15 }
  0x9e   : > { %3035 = vmatpush3.msra.mxu0 %v3385_v14  ;;  %3036 = vmatprep.mubr.msk.f32.mxu0 %vm3288_vm0, %v3287_v0 }
  0x9f   : > { %3039 = vmatprep.subr.mxu0 %v3287_v0  ;;  %v2748_v30 = vpop.permute.xlu0 %2747 }
  0xa1   : > { %3077 = vmatmul.mubr.msk.f32.vlgmr.msra.gmra.mrb[0].mxu1 %vm198_vm1, %v3394_v15 }
  0xa2   : > { %3080 = vmatpush3.msra.mxu1 %v3404_v16  ;;  %3081 = vmatprep.mubr.msk.f32.mxu1 %vm3288_vm0, %v3287_v0 }
  0xa3   : > { %3084 = vmatprep.subr.mxu1 %v3287_v0 }
  0xa5   : > { %3037 = vmatmul.mubr.msk.f32.vlgmr.msra.gmra.mrb[0].mxu0 %vm198_vm1, %v3413_v17 }
  0xa6   : > { %3040 = vmatpush3.msra.mxu0 %v3404_v16  ;;  %3041 = vmatprep.mubr.msk.f32.mxu0 %vm3288_vm0, %v3287_v0 }
  0xa7   : > { %3044 = vmatprep.subr.mxu0 %v3287_v0 }
  0xa9   : > { %3082 = vmatmul.mubr.msk.f32.vlgmr.msra.gmra.mrb[0].mxu1 %vm198_vm1, %v3413_v17 }
  0xaa   : > { %3085 = vmatpush3.msra.mxu1 %v1244_v18  ;;  %3086 = vmatprep.mubr.msk.f32.mxu1 %vm3288_vm0, %v3287_v0 }
  0xab   : > { %3089 = vmatprep.subr.mxu1 %v3287_v0 }
  0xac   : > { %v2825_v40 = vpop.permute.xlu1 %2824 }
  0xad   : > { %3042 = vmatmul.mubr.msk.f32.vlgmr.msra.gmra.mrb[0].mxu0 %vm198_vm1, %v3429_v19 }
  0xae   : > { %3045 = vmatpush3.msra.mxu0 %v657_v20  ;;  %3046 = vmatprep.mubr.msk.f32.mxu0 %vm3288_vm0, %v3287_v0 }
  0xaf   : > { %3049 = vmatprep.subr.mxu0 %v3287_v0 }
  0xb1   : > { %3087 = vmatmul.mubr.msk.f32.vlgmr.msra.gmra.mrb[0].mxu1 %vm198_vm1, %v3429_v19 }
  0xb2   : > { %3090 = vmatpush3.msra.mxu1 %v734_v21  ;;  %3091 = vmatprep.mubr.msk.f32.mxu1 %vm3288_vm0, %v3287_v0 }
  0xb3   : > { %3094 = vmatprep.subr.mxu1 %v3287_v0 }
  0xb5   : > { %3047 = vmatmul.mubr.msk.f32.vlgmr.msra.gmra.mrb[0].mxu0 %vm198_vm1, %v3444_v22 }
  0xb6   : > { %3050 = vmatpush3.msra.mxu0 %v734_v21  ;;  %3051 = vmatprep.mubr.msk.f32.mxu0 %vm3288_vm0, %v3287_v0 }
  0xb7   : > { %3054 = vmatprep.subr.mxu0 %v3287_v0 }
  0xb9   : > { %3092 = vmatmul.mubr.msk.f32.vlgmr.msra.gmra.mrb[0].mxu1 %vm198_vm1, %v3444_v22 }
  0xba   : > { %3095 = vmatpush3.msra.mxu1 %v811_v23  ;;  %3096 = vmatprep.mubr.msk.f32.mxu1 %vm3288_vm0, %v3287_v0 }
  0xbb   : > { %3099 = vmatprep.subr.mxu1 %v3287_v0 }
  0xbd   : > { %3052 = vmatmul.mubr.msk.f32.vlgmr.msra.gmra.mrb[0].mxu0 %vm198_vm1, %v3459_v24 }
  0xbe   : > { %3055 = vmatpush3.msra.mxu0 %v811_v23  ;;  %3056 = vmatprep.mubr.msk.f32.mxu0 %vm3288_vm0, %v3287_v0 }
  0xbf   : > { %3104 = vmatprep.subr.mxu0 %v3287_v0 }
  0xc1   : > { %3097 = vmatmul.mubr.msk.f32.vlgmr.msra.gmra.mrb[0].mxu1 %vm198_vm1, %v3459_v24 }
  0xc2   : > { %3100 = vmatpush3.msra.mxu1 %v1460_v25  ;;  %3101 = vmatprep.mubr.msk.f32.mxu1 %vm3288_vm0, %v3287_v0 }
  0xc3   : > { %3149 = vmatprep.subr.mxu1 %v3287_v0 }
  0xc5   : > { %3057 = vmatmul.mubr.msk.f32.vlgmr.msra.gmra.mrb[0].mxu0 %vm198_vm1, %v3474_v26 }
  0xc6   : > { %3105 = vmatpush3.msra.mxu0 %v3385_v14  ;;  %3106 = vmatprep.mubr.msk.f32.mxu0 %vm3288_vm0, %v3287_v0 }
  0xc7   : > { %3109 = vmatprep.subr.mxu0 %v3287_v0 }
  0xc9   : > { %3102 = vmatmul.mubr.msk.f32.vlgmr.msra.gmra.mrb[0].mxu1 %vm198_vm1, %v3474_v26  ;;  %3107 = vmatmul.mubr.msk.f32.vlgmr.msra.gmra.mrb[2].mxu0 %vm198_vm1, %v3341_v5 }
  0xca   : > { %3110 = vmatpush3.msra.mxu0 %v3377_v13  ;;  %3150 = vmatpush3.msra.mxu1 %v3404_v16 }
  0xcb   : > { %3151 = vmatprep.mubr.msk.f32.mxu1 %vm3288_vm0, %v3287_v0  ;;  %3154 = vmatprep.subr.mxu1 %v3287_v0 }
  0xcc   : > { %3111 = vmatprep.mubr.msk.f32.mxu0 %vm3288_vm0, %v3287_v0  ;;  %3114 = vmatprep.subr.mxu0 %v3287_v0 }
  0xcd   : > { %3152 = vmatmul.mubr.msk.f32.vlgmr.msra.gmra.mrb[2].mxu1 %vm198_vm1, %v3341_v5 }
  0xce   : > { %3155 = vmatpush3.msra.mxu1 %v3385_v14  ;;  %3156 = vmatprep.mubr.msk.f32.mxu1 %vm3288_vm0, %v3287_v0 }
  0xcf   : > { %3159 = vmatprep.subr.mxu1 %v3287_v0 }
  0xd1   : > { %3112 = vmatmul.mubr.msk.f32.vlgmr.msra.gmra.mrb[2].mxu0 %vm198_vm1, %v3355_v8 }
  0xd2   : > { %3115 = vmatpush3.msra.mxu0 %v3404_v16  ;;  %3116 = vmatprep.mubr.msk.f32.mxu0 %vm3288_vm0, %v3287_v0 }
  0xd3   : > { %3119 = vmatprep.subr.mxu0 %v3287_v0 }
  0xd5   : > { %3157 = vmatmul.mubr.msk.f32.vlgmr.msra.gmra.mrb[2].mxu1 %vm198_vm1, %v3355_v8 }
  0xd6   : > { %3160 = vmatpush3.msra.mxu1 %v1244_v18  ;;  %3161 = vmatprep.mubr.msk.f32.mxu1 %vm3288_vm0, %v3287_v0 }
  0xd7   : > { %3164 = vmatprep.subr.mxu1 %v3287_v0 }
  0xd9   : > { %3117 = vmatmul.mubr.msk.f32.vlgmr.msra.gmra.mrb[2].mxu0 %vm198_vm1, %v3373_v12 }
  0xda   : > { %3120 = vmatpush3.msra.mxu0 %v657_v20  ;;  %3121 = vmatprep.mubr.msk.f32.mxu0 %vm3288_vm0, %v3287_v0 }
  0xdb   : > { %3124 = vmatprep.subr.mxu0 %v3287_v0 }
  0xdd   : > { %3162 = vmatmul.mubr.msk.f32.vlgmr.msra.gmra.mrb[2].mxu1 %vm198_vm1, %v3373_v12 }
  0xde   : > { %3165 = vmatpush3.msra.mxu1 %v734_v21  ;;  %3166 = vmatprep.mubr.msk.f32.mxu1 %vm3288_vm0, %v3287_v0 }
  0xdf   : > { %3169 = vmatprep.subr.mxu1 %v3287_v0 }
  0xe1   : > { %3122 = vmatmul.mubr.msk.f32.vlgmr.msra.gmra.mrb[2].mxu0 %vm198_vm1, %v3394_v15 }
  0xe2   : > { %3125 = vmatpush3.msra.mxu0 %v734_v21  ;;  %3126 = vmatprep.mubr.msk.f32.mxu0 %vm3288_vm0, %v3287_v0 }
  0xe3   : > { %3129 = vmatprep.subr.mxu0 %v3287_v0 }
  0xe5   : > { %3167 = vmatmul.mubr.msk.f32.vlgmr.msra.gmra.mrb[2].mxu1 %vm198_vm1, %v3394_v15 }
  0xe6   : > { %3170 = vmatpush3.msra.mxu1 %v811_v23  ;;  %3171 = vmatprep.mubr.msk.f32.mxu1 %vm3288_vm0, %v3287_v0 }
  0xe7   : > { %3174 = vmatprep.subr.mxu1 %v3287_v0 }
  0xe9   : > { %3127 = vmatmul.mubr.msk.f32.vlgmr.msra.gmra.mrb[2].mxu0 %vm198_vm1, %v3413_v17 }
  0xea   : > { %3130 = vmatpush3.msra.mxu0 %v811_v23  ;;  %3131 = vmatprep.mubr.msk.f32.mxu0 %vm3288_vm0, %v3287_v0 }
  0xeb   : > { %3134 = vmatprep.subr.mxu0 %v3287_v0 }
  0xed   : > { %3172 = vmatmul.mubr.msk.f32.vlgmr.msra.gmra.mrb[2].mxu1 %vm198_vm1, %v3413_v17 }
  0xee   : > { %3175 = vmatpush3.msra.mxu1 %v1460_v25  ;;  %3176 = vmatprep.mubr.msk.f32.mxu1 %vm3288_vm0, %v3287_v0 }
  0xef   : > { %3179 = vmatprep.subr.mxu1 %v3287_v0 }
  0xf1   : > { %3132 = vmatmul.mubr.msk.f32.vlgmr.msra.gmra.mrb[2].mxu0 %vm198_vm1, %v3429_v19 }
  0xf2   : > { %3135 = vmatpush3.msra.mxu0 %v1959_v27  ;;  %3136 = vmatprep.mubr.msk.f32.mxu0 %vm3288_vm0, %v3287_v0 }
  0xf3   : > { %3139 = vmatprep.subr.mxu0 %v3287_v0 }
  0xf5   : > { %3177 = vmatmul.mubr.msk.f32.vlgmr.msra.gmra.mrb[2].mxu1 %vm198_vm1, %v3429_v19 }
  0xf6   : > { %3180 = vmatpush3.msra.mxu1 %v2033_v28  ;;  %3181 = vmatprep.mubr.msk.f32.mxu1 %vm3288_vm0, %v3287_v0 }
  0xf7   : > { %3184 = vmatprep.subr.mxu1 %v3287_v0 }
  0xf9   : > { %3137 = vmatmul.mubr.msk.f32.vlgmr.msra.gmra.mrb[2].mxu0 %vm198_vm1, %v3444_v22 }
  0xfa   : > { %3140 = vmatpush3.msra.mxu0 %v2033_v28  ;;  %3141 = vmatprep.mubr.msk.f32.mxu0 %vm3288_vm0, %v3287_v0 }
  0xfb   : > { %3144 = vmatprep.subr.mxu0 %v3287_v0 }
  0xfd   : > { %3182 = vmatmul.mubr.msk.f32.vlgmr.msra.gmra.mrb[2].mxu1 %vm198_vm1, %v3444_v22 }
  0xfe   : > { %3185 = vmatpush3.msra.mxu1 %v2107_v29  ;;  %3186 = vmatprep.mubr.msk.f32.mxu1 %vm3288_vm0, %v3287_v0 }
  0xff   : > { %3189 = vmatprep.subr.mxu1 %v3287_v0 }
 0x101   : > { %3142 = vmatmul.mubr.msk.f32.vlgmr.msra.gmra.mrb[2].mxu0 %vm198_vm1, %v3459_v24 }
 0x102   : > { %3145 = vmatpush3.msra.mxu0 %v2107_v29  ;;  %3146 = vmatprep.mubr.msk.f32.mxu0 %vm3288_vm0, %v3287_v0 }
 0x105   : > { %3187 = vmatmul.mubr.msk.f32.vlgmr.msra.gmra.mrb[2].mxu1 %vm198_vm1, %v3459_v24 }
 0x106   : > { %3190 = vmatpush3.msra.mxu1 %v2748_v30  ;;  %3191 = vmatprep.mubr.msk.f32.mxu1 %vm3288_vm0, %v3287_v0 }
 0x109   : > { %3147 = vmatmul.mubr.msk.f32.vlgmr.msra.gmra.mrb[2].mxu0 %vm198_vm1, %v3474_v26 }
 0x10d   : > { %3192 = vmatmul.mubr.msk.f32.vlgmr.msra.gmra.mrb[2].mxu1 %vm198_vm1, %v3474_v26 }
 0x198   : > { %v882_v31 = vpop.f32.mrb[0].mxu0 }
 0x199   : > { %v3058_v32 = vpop.f32.mrb[1].mxu0 }
 0x19c   : > { %v1528_v33 = vpop.f32.mrb[0].mxu1 }
 0x19d   : > { %v1533_v34 = vmax.f32 %v882_v31, %v1528_v33  ;;  %v3103_v35 = vpop.f32.mrb[1].mxu1 }
 0x1dc   : > { %v2175_v36 = vpop.f32.mrb[2].mxu0 }
 0x1dd   : > { %v2180_v37 = vmax.f32 %v1533_v34, %v2175_v36  ;;  %v3148_v38 = vpop.f32.mrb[3].mxu0 }
 0x1e0   : > { %v2816_v39 = vpop.f32.mrb[2].mxu1 }
 0x1e1   : > { %v2821_v41 = vmax.f32 %v2180_v37, %v2816_v39  ;;  %v3193_v42 = vpop.f32.mrb[3].mxu1 }
 0x1e3   : > { %v2827_v43 = vadd.f32 %v2825_v40, %v2821_v41 }
 0x1e5   : > { %v2828_v44 = vmax.f32 %v2827_v43, 0.0 }
 0x1e7   : > { %2830 = vst.msk [vmem:[%s168_s24] sm:$0xff] %vm2829_vm2, %v2828_v44 }
 0x1e8 PF: > { %s13_s12 = sadd.s32 1, %s3285_s12  }
 0x1e9   : > { %p10_p4 = scmp.ge.s32.totalorder %s13_s12, 4  }
 0x1eb   :  { %12 = sbr.rel (!%p10_p4) target bundleno = 1 (0x1), region = 73 }

// kernel: mycnn_forward.5
= control target key start
LH: loop header
LB: loop body
LE: loop exit
PB: predicated region body
PF: predicated region fallthrough
CT: control target
= control target key end

     0   :  { %v546_v47 = vmov 1983009808   ;;  %v98_v49 = vlaneseq  ;;  %s806_s0 = inlined_call_operand.vmem [shape: f32[2,512], index: 0, kind: input, shape index: {}]   ;;  %s807_s1 = inlined_call_operand.vmem [shape: f32[512,32], index: 1, kind: input, shape index: {}]   ;;  %s808_s2 = inlined_call_operand.vmem [shape: f32[1,32], index: 2, kind: input, shape index: {}]   ;;  %s809_s3 = inlined_call_operand.vmem [shape: f32[32,10], index: 3, kind: input, shape index: {}]   ;;  %s810_s4 = inlined_call_operand.vmem [shape: f32[1,10], index: 4, kind: input, shape index: {}]   ;;  %s811_s5 = inlined_call_operand.hbm [shape: f32[2,10], index: 5, kind: output, shape index: {}]  }
   0x1   :  { %v38_v0 = vld [vmem:[%s807_s1 + $0x80] sm:$0xff]  ;;  %v39_v1 = vld [vmem:[%s807_s1 + $0x88] sm:$0xff]  ;;  %v40_v11 = vld [vmem:[%s807_s1 + $0x90] sm:$0xff]  ;;  %v96_v48 = vunpack.c.l.s4 %v546_v47 }
   0x2   :  { %v22_v2 = vld [vmem:[%s807_s1] sm:$0xff]  ;;  %v446_v3 = vpack.c.bf16 %v39_v1, %v38_v0  ;;  %v23_v4 = vld [vmem:[%s807_s1 + $0x8] sm:$0xff]  ;;  %v41_v13 = vld [vmem:[%s807_s1 + $0x98] sm:$0xff]  ;;  %v99_v0 = vshrl.u32 %v98_v49, 7 }
   0x3   :  { %v70_v5 = vld [vmem:[%s807_s1 + $0x180] sm:$0xff]  ;;  %v71_v6 = vld [vmem:[%s807_s1 + $0x188] sm:$0xff]  ;;  %v448_v7 = vpack.c.bf16 %v23_v4, %v22_v2  ;;  %v24_v14 = vld [vmem:[%s807_s1 + $0x10] sm:$0xff]  ;;  %v450_v16 = vpack.c.bf16 %v41_v13, %v40_v11  ;;  %v97_v63 = vunpack.c.0.s8 %v96_v48 }
   0x4   :  { %v478_v8 = vpack.c.bf16 %v71_v6, %v70_v5  ;;  %v54_v9 = vld [vmem:[%s807_s1 + $0x100] sm:$0xff]  ;;  %v55_v10 = vld [vmem:[%s807_s1 + $0x108] sm:$0xff]  ;;  %447 = vmatprep.subr.bf16.mxu0 %v446_v3  ;;  %v25_v15 = vld [vmem:[%s807_s1 + $0x18] sm:$0xff] }
   0x5   :  { %v480_v12 = vpack.c.bf16 %v55_v10, %v54_v9  ;;  %449 = vmatpush3.bf16.msra.mxu0 %v448_v7  ;;  %v452_v17 = vpack.c.bf16 %v25_v15, %v24_v14  ;;  %v72_v18 = vld [vmem:[%s807_s1 + $0x190] sm:$0xff]  ;;  %v73_v19 = vld [vmem:[%s807_s1 + $0x198] sm:$0xff]  ;;  %v42_v23 = vld [vmem:[%s807_s1 + $0xa0] sm:$0xff]  ;;  %v100_v13 = vsub.s32 %v97_v63, %v99_v0 }
   0x6   :  { %479 = vmatprep.subr.bf16.mxu1 %v478_v8  ;;  %v56_v20 = vld [vmem:[%s807_s1 + $0x110] sm:$0xff]  ;;  %v482_v21 = vpack.c.bf16 %v73_v19, %v72_v18  ;;  %v57_v22 = vld [vmem:[%s807_s1 + $0x118] sm:$0xff]  ;;  %v43_v24 = vld [vmem:[%s807_s1 + $0xa8] sm:$0xff]  ;;  %451 = vmatprep.subr.bf16.mxu0 %v450_v16 }
   0x7   :  { %481 = vmatpush3.bf16.msra.mxu1 %v480_v12  ;;  %v484_v25 = vpack.c.bf16 %v57_v22, %v56_v20  ;;  %v454_v26 = vpack.c.bf16 %v43_v24, %v42_v23  ;;  %v26_v27 = vld [vmem:[%s807_s1 + $0x20] sm:$0xff]  ;;  %v27_v28 = vld [vmem:[%s807_s1 + $0x28] sm:$0xff]  ;;  %v44_v35 = vld [vmem:[%s807_s1 + $0xb0] sm:$0xff] }
   0x8   :  { %v74_v29 = vld [vmem:[%s807_s1 + $0x1a0] sm:$0xff]  ;;  %483 = vmatprep.subr.bf16.mxu1 %v482_v21  ;;  %v75_v30 = vld [vmem:[%s807_s1 + $0x1a8] sm:$0xff]  ;;  %v456_v33 = vpack.c.bf16 %v27_v28, %v26_v27  ;;  %v45_v36 = vld [vmem:[%s807_s1 + $0xb8] sm:$0xff] }
   0x9   :  { %v58_v31 = vld [vmem:[%s807_s1 + $0x120] sm:$0xff]  ;;  %v59_v32 = vld [vmem:[%s807_s1 + $0x128] sm:$0xff]  ;;  %453 = vmatpush3.bf16.msra.mxu0 %v452_v17  ;;  %v486_v34 = vpack.c.bf16 %v75_v30, %v74_v29  ;;  %v28_v37 = vld [vmem:[%s807_s1 + $0x30] sm:$0xff]  ;;  %v458_v39 = vpack.c.bf16 %v45_v36, %v44_v35 }
   0xa   :  { %455 = vmatprep.subr.bf16.mxu0 %v454_v26  ;;  %v488_v38 = vpack.c.bf16 %v59_v32, %v58_v31  ;;  %v29_v40 = vld [vmem:[%s807_s1 + $0x38] sm:$0xff]  ;;  %v76_v41 = vld [vmem:[%s807_s1 + $0x1b0] sm:$0xff]  ;;  %v46_v46 = vld [vmem:[%s807_s1 + $0xc0] sm:$0xff] }
   0xb   :  { %485 = vmatpush3.bf16.msra.mxu1 %v484_v25  ;;  %v77_v42 = vld [vmem:[%s807_s1 + $0x1b8] sm:$0xff]  ;;  %v60_v44 = vld [vmem:[%s807_s1 + $0x130] sm:$0xff]  ;;  %v47_v50 = vld [vmem:[%s807_s1 + $0xc8] sm:$0xff]  ;;  %v460_v51 = vpack.c.bf16 %v29_v40, %v28_v37 }
   0xc   :  { %487 = vmatprep.subr.bf16.mxu1 %v486_v34  ;;  %v490_v43 = vpack.c.bf16 %v77_v42, %v76_v41  ;;  %v61_v45 = vld [vmem:[%s807_s1 + $0x138] sm:$0xff]  ;;  %v78_v52 = vld [vmem:[%s807_s1 + $0x1c0] sm:$0xff]  ;;  %v79_v53 = vld [vmem:[%s807_s1 + $0x1c8] sm:$0xff]  ;;  %v462_v55 = vpack.c.bf16 %v47_v50, %v46_v46 }
   0xd   :  { %457 = vmatpush3.bf16.msra.mxu0 %v456_v33  ;;  %v492_v54 = vpack.c.bf16 %v61_v45, %v60_v44  ;;  %v30_v56 = vld [vmem:[%s807_s1 + $0x40] sm:$0xff]  ;;  %v31_v57 = vld [vmem:[%s807_s1 + $0x48] sm:$0xff]  ;;  %v494_v59 = vpack.c.bf16 %v79_v53, %v78_v52  ;;  %v48_v61 = vld [vmem:[%s807_s1 + $0xd0] sm:$0xff] }
   0xe   :  { %459 = vmatprep.subr.bf16.mxu0 %v458_v39  ;;  %v62_v58 = vld [vmem:[%s807_s1 + $0x140] sm:$0xff]  ;;  %v63_v60 = vld [vmem:[%s807_s1 + $0x148] sm:$0xff]  ;;  %v49_v62 = vld [vmem:[%s807_s1 + $0xd8] sm:$0xff]  ;;  %v464_v3 = vpack.c.bf16 %v31_v57, %v30_v56 }
   0xf   :  { %489 = vmatpush3.bf16.msra.mxu1 %v488_v38  ;;  %v80_v1 = vld [vmem:[%s807_s1 + $0x1d0] sm:$0xff]  ;;  %v81_v2 = vld [vmem:[%s807_s1 + $0x1d8] sm:$0xff]  ;;  %v496_v4 = vpack.c.bf16 %v63_v60, %v62_v58  ;;  %v466_v5 = vpack.c.bf16 %v49_v62, %v48_v61  ;;  %v50_v11 = vld [vmem:[%s807_s1 + $0xe0] sm:$0xff] }
  0x10   :  { %491 = vmatprep.subr.bf16.mxu1 %v490_v43  ;;  %v32_v6 = vld [vmem:[%s807_s1 + $0x50] sm:$0xff]  ;;  %v33_v7 = vld [vmem:[%s807_s1 + $0x58] sm:$0xff]  ;;  %v498_v9 = vpack.c.bf16 %v81_v2, %v80_v1  ;;  %v51_v12 = vld [vmem:[%s807_s1 + $0xe8] sm:$0xff] }
  0x11   :  { %461 = vmatpush3.bf16.msra.mxu0 %v460_v51  ;;  %v64_v8 = vld [vmem:[%s807_s1 + $0x150] sm:$0xff]  ;;  %v65_v10 = vld [vmem:[%s807_s1 + $0x158] sm:$0xff]  ;;  %v82_v14 = vld [vmem:[%s807_s1 + $0x1e0] sm:$0xff]  ;;  %v468_v16 = vpack.c.bf16 %v33_v7, %v32_v6  ;;  %v470_v20 = vpack.c.bf16 %v51_v12, %v50_v11 }
  0x12   :  { %463 = vmatprep.subr.bf16.mxu0 %v462_v55  ;;  %v83_v15 = vld [vmem:[%s807_s1 + $0x1e8] sm:$0xff]  ;;  %v34_v17 = vld [vmem:[%s807_s1 + $0x60] sm:$0xff]  ;;  %v500_v19 = vpack.c.bf16 %v65_v10, %v64_v8 }
  0x13   :  { %493 = vmatpush3.bf16.msra.mxu1 %v492_v54  ;;  %v35_v18 = vld [vmem:[%s807_s1 + $0x68] sm:$0xff]  ;;  %v66_v21 = vld [vmem:[%s807_s1 + $0x160] sm:$0xff] }
  0x14   :  { %495 = vmatprep.subr.bf16.mxu1 %v494_v59  ;;  %v21_v22 = vld [vmem:[%s806_s0] sm:$0xff] }
  0x15   :  { %465 = vmatpush3.bf16.msra.mxu0 %v464_v3 }
  0x16   :  { %467 = vmatprep.subr.bf16.mxu0 %v466_v5 }
  0x17   :  { %497 = vmatpush3.bf16.msra.mxu1 %v496_v4 }
  0x18   :  { %10 = vsyncpa [#allocation3], 0  ;;  %499 = vmatprep.subr.bf16.mxu1 %v498_v9  ;;  %v502_v23 = vpack.c.bf16 %v83_v15, %v82_v14  ;;  %v67_v24 = vld [vmem:[%s807_s1 + $0x168] sm:$0xff]  ;;  %v52_v25 = vld [vmem:[%s807_s1 + $0xf0] sm:$0xff]  ;;  %v101_v27 = vrot.slane %v21_v22, %v100_v13  ;;  %v94_v28 = vcombine.high %v21_v22, %v21_v22  ;;  %v472_v31 = vpack.c.bf16 %v35_v18, %v34_v17  ;;  %s550_s7 = smov [#allocation2]  }
  0x19   :  { %v53_v26 = vld [vmem:[%s807_s1 + $0xf8] sm:$0xff]  ;;  %v84_v29 = vld [vmem:[%s807_s1 + $0x1f0] sm:$0xff]  ;;  %469 = vmatpush3.bf16.msra.mxu0 %v468_v16  ;;  %v504_v34 = vpack.c.bf16 %v67_v24, %v66_v21  ;;  %v256_v44 = vld [vmem:[%s809_s3] sm:$0xff]  ;;  %v547_v47 = vmov 0.0|0.0   ;;  %vm548_vm0 = vmmov 0   ;;  %v549_v51 = vmov 0.0  }
  0x1a   :  { %v85_v30 = vld [vmem:[%s807_s1 + $0x1f8] sm:$0xff]  ;;  %v109_v32 = vcombine.high %v101_v27, %v101_v27  ;;  %v108_v33 = vrot.slane %v94_v28, %v100_v13  ;;  %471 = vmatprep.subr.bf16.mxu0 %v470_v20  ;;  %v474_v35 = vpack.c.bf16 %v53_v26, %v52_v25  ;;  %v36_v36 = vld [vmem:[%s807_s1 + $0x70] sm:$0xff]  ;;  %v257_v45 = vld [vmem:[%s809_s3 + $0x8] sm:$0xff]  ;;  %vm267_vm1 = vcmask 261120   ;;  %s349_s8 = sshll.u32 %s550_s7, 4  ;;  %s350_s8 = int_to_ptr.vmem [resolvable:$true] %s349_s8 }
  0x1b   :  { %501 = vmatpush3.bf16.msra.mxu1 %v500_v19  ;;  %v37_v37 = vld [vmem:[%s807_s1 + $0x78] sm:$0xff]  ;;  %v506_v38 = vpack.c.bf16 %v85_v30, %v84_v29  ;;  %v68_v39 = vld [vmem:[%s807_s1 + $0x170] sm:$0xff]  ;;  %v511_v46 = vpack.c.bf16 %v257_v45, %v256_v44  ;;  %v357_v53 = vld [vmem:[%s808_s2] ss:$0 sm:$0xff]  ;;  %vm341_vm2 = vcmask 74752   ;;  %s522_s2 = scalar_lea.vmem %s350_s8, 32  ;;  %p527_p1 = scmp.lt.s32.totalorder %s350_s8, %s350_s8 }
  0x1c   :  { %503 = vmatprep.subr.bf16.mxu1 %v502_v23  ;;  %v69_v40 = vld [vmem:[%s807_s1 + $0x178] sm:$0xff]  ;;  %179 = vmatprep.mubr.f32.mxu0 %v109_v32  ;;  %v110_v41 = vcombine.high %v108_v33, %v108_v33  ;;  %v476_v42 = vpack.c.bf16 %v37_v37, %v36_v36  ;;  %v258_v48 = vld [vmem:[%s809_s3 + $0x10] sm:$0xff]  ;;  %v358_v62 = vld [vmem:[%s810_s4] ss:$0 sm:$0xff]  ;;  %p523_p0 = scmp.ne.s32.totalorder %s350_s8, %s522_s2  ;;  %p528_p2 = scmp.lt.s32.totalorder %s522_s2, %s522_s2 }
  0x1d   :  { %473 = vmatpush3.bf16.msra.mxu0 %v472_v31  ;;  %v508_v43 = vpack.c.bf16 %v69_v40, %v68_v39  ;;  %v259_v49 = vld [vmem:[%s809_s3 + $0x18] sm:$0xff] }
  0x1e   :  { %249 = vmatprep.mubr.f32.mxu1 %v110_v41  ;;  %475 = vmatprep.subr.bf16.mxu0 %v474_v35  ;;  %v514_v50 = vpack.c.bf16 %v259_v49, %v258_v48  ;;  %p529_p3 = por %p528_p2, %p527_p1 }
  0x1f   :  { %505 = vmatpush3.bf16.msra.mxu1 %v504_v34 }
  0x20   :  { %507 = vmatprep.subr.bf16.mxu1 %v506_v38  ;;  %p530_p4 = pnand %p529_p3, %p523_p0 }
  0x21   :  { %477 = vmatpush3.bf16.msra.mxu0 %v476_v42 }
  0x22   :  { %510 = vmatprep.subr.bf16.mxu0 %v547_v47 }
  0x23   :  { %509 = vmatpush3.bf16.msra.mxu1 %v508_v43 }
  0x24   :  { %180 = vmatmul.mubr.f32.vlgmr.msra.gmra.mrb[0].mxu0 %v101_v27 }
  0x25   :  { %512 = vmatpush3.bf16.msra.mxu0 %v511_v46  ;;  %443 = vmatprep.mubr.msk.f32.mxu0 %vm548_vm0, %v549_v51 }
  0x26   :  { %250 = vmatmul.mubr.f32.vlgmr.msra.gmra.mrb[0].mxu1 %v108_v33  ;;  %513 = vmatprep.subr.bf16.mxu0 %v547_v47 }
  0x29   :  { %515 = vmatpush3.bf16.msra.mxu0 %v514_v50 }
  0xf7   :  { %v392_v52 = vpop.f32.mrb[0].mxu0 }
  0xf8   :  { %v393_v54 = vpop.f32.mrb[1].mxu0 }
  0xf9   :  { %v427_v55 = vpop.f32.mrb[0].mxu1  ;;  %v394_v56 = vadd.f32 %v393_v54, %v392_v52 }
  0xfa   :  { %v428_v57 = vpop.f32.mrb[1].mxu1 }
  0xfb   :  { %v429_v58 = vadd.f32 %v428_v57, %v427_v55  ;;  %v182_v59 = vadd.f32 %v394_v56, %v357_v53 }
  0xfd   :  { %v252_v60 = vadd.f32 %v429_v58, %v182_v59 }
  0xff   :  { %v255_v61 = vmax.f32 %v252_v60, 0.0 }
 0x101   :  { %444 = vmatmul.mubr.msk.f32.vlgmr.msra.gmra.mrb[2].mxu0 %vm267_vm1, %v255_v61 }
 0x1d4   :  { %v337_v63 = vpop.f32.mrb[2].mxu0 }
 0x1d5   :  { %v338_v0 = vadd.f32 %v358_v62, %v337_v63  ;;  %v445_v1 = vpop.f32.mrb[3].mxu0 }
 0x1d7   :  { %342 = vst.msk [vmem:[#allocation2] sm:$0x3] %vm341_vm2, %v338_v0 }
 0x1d8   :  { %533 = shalt.err (!%p530_p4)
}
 0x1d9   :  { %s534_s11 = scalar_lea.hbm %s811_s5, 32 }
 0x1da   :  { %p535_p5 = scmp.ne.s32.totalorder %s811_s5, %s534_s11  ;;  %p538_p6 = scmp.lt.u32.totalorder %s534_s11, %s811_s5 }
 0x1dc   :  { %p540_p7 = pnand %p538_p6, %p535_p5 }
 0x1de   :  { %543 = shalt.err (!%p540_p7)
}
 0x1df   :  { %352 = dma.vmem_to_hbm [thread:$0]  %s350_s8, 32, %s811_s5, [#allocation3]  }
 0x1e0   :  { %544 = dma.done.wait [#allocation3], 32  }
 0x1e1   :  { %545 = vsyncadd [#allocation3], 4294967264 }
 0x1e2   :  { %356 = vsyncpa [#allocation3], 1 }

</bundles_post_ra>
